<compile_context>
chip_gen: v5e
topology: v5e:2x2
jax: 0.10.0
libtpu: 0.0.40
codegen_flags: <defaults>
</compile_context>

<pallas_src>
import math
from functools import partial

import jax
import jax.numpy as jnp
from jax import lax
from jax.experimental import pallas as pl
from jax.experimental.pallas import tpu as pltpu

# ---------------- config (small, TPU-lane-friendly) ----------------
BATCH = 2
SEQ = 16
D_MODEL = 128
N_HEADS = 4
D_HEAD = 32
D_MLP = 256
LN_EPS = 1e-5
IGNORE = -1.0e8  # matches the module's IGNORE buffer


def _layernorm(x, w, b):
    # x: (N, D); biased variance, eps inside sqrt (matches PyTorch module)
    mean = jnp.mean(x, axis=-1, keepdims=True)
    var = jnp.mean((x - mean) ** 2, axis=-1, keepdims=True)
    xhat = (x - mean) / jnp.sqrt(var + LN_EPS)
    return xhat * w + b          # w, b are lane-dense (1, D)


def _gelu_new(x):
    # GPT-2 "new" gelu (tanh routes to the EUP)
    return 0.5 * x * (1.0 + jnp.tanh(
        math.sqrt(2.0 / math.pi) * (x + 0.044715 * x * x * x)))


def transformer_block_kernel(
    x_ref,                       # (BB, S, D)  f32
    ln1_w_ref, ln1_b_ref,        # (1, D) f32
    wqkv_ref, bqkv_ref,          # (D, 3*H*Dh) bf16, (1, 3*H*Dh) f32
    wo_ref, bo_ref,              # (H*Dh, D) bf16, (1, D) f32
    ln2_w_ref, ln2_b_ref,        # (1, D) f32
    win_ref, bin_ref,            # (D, M) bf16, (1, M) f32
    wout_ref, bout_ref,          # (M, D) bf16, (1, D) f32
    out_ref,                     # (BB, S, D) f32
    *, n_heads, d_head,
):
    BB, S, D = x_ref.shape
    hdh = n_heads * d_head
    x = x_ref[...].reshape(BB * S, D)          # fold batch into sublanes

    # ---------------- LN1 (f32) ----------------
    normed_pre = _layernorm(x, ln1_w_ref[...], ln1_b_ref[...])

    # ---------------- fused QKV projection: one lane-dense matmul ----------------
    qkv = jnp.dot(normed_pre.astype(jnp.bfloat16), wqkv_ref[...],
                  preferred_element_type=jnp.float32) + bqkv_ref[...]   # (BB*S, 3*H*Dh)

    # causal mask, hoisted once and broadcast over heads
    row = lax.broadcasted_iota(jnp.int32, (S, S), 0)
    col = lax.broadcasted_iota(jnp.int32, (S, S), 1)
    non_causal = jnp.broadcast_to((col > row)[None, :, :], (n_heads, S, S))
    scale = 1.0 / math.sqrt(d_head)

    # ---------------- attention core (tiny tiles; kept in f32) ----------------
    z_parts = []
    for b in range(BB):                         # static unroll over batch in the block
        qkv_b = qkv[b * S:(b + 1) * S]
        q_b = qkv_b[:, :hdh]
        k_b = qkv_b[:, hdh:2 * hdh]
        v_b = qkv_b[:, 2 * hdh:]

        # per-head scores stacked -> ONE softmax pass over (H, S, S)
        scores = jnp.stack(
            [jnp.dot(q_b[:, h * d_head:(h + 1) * d_head],
                     k_b[:, h * d_head:(h + 1) * d_head].T,
                     preferred_element_type=jnp.float32)
             for h in range(n_heads)], axis=0) * scale
        scores = jnp.where(non_causal, jnp.float32(IGNORE), scores)
        m = jnp.max(scores, axis=-1, keepdims=True)
        e = jnp.exp(scores - m)
        denom = jnp.sum(e, axis=-1, keepdims=True)
        probs = e * pl.reciprocal(denom, approx=False)     # EUP recip instead of VALU divide

        # per-head PV, re-packed into a lane-dense (S, H*Dh) tile
        z_b = jnp.concatenate(
            [jnp.dot(probs[h], v_b[:, h * d_head:(h + 1) * d_head],
                     preferred_element_type=jnp.float32)
             for h in range(n_heads)], axis=-1)
        z_parts.append(z_b)
    z = z_parts[0] if BB == 1 else jnp.concatenate(z_parts, axis=0)     # (BB*S, H*Dh)

    # ---------------- fused output projection ----------------
    attn_out = jnp.dot(z.astype(jnp.bfloat16), wo_ref[...],
                       preferred_element_type=jnp.float32) + bo_ref[...]
    resid_mid = x + attn_out

    # ---------------- LN2 + MLP ----------------
    normed_mid = _layernorm(resid_mid, ln2_w_ref[...], ln2_b_ref[...])
    pre = jnp.dot(normed_mid.astype(jnp.bfloat16), win_ref[...],
                  preferred_element_type=jnp.float32) + bin_ref[...]
    post = _gelu_new(pre)
    mlp_out = jnp.dot(post.astype(jnp.bfloat16), wout_ref[...],
                      preferred_element_type=jnp.float32) + bout_ref[...]

    out_ref[...] = (resid_mid + mlp_out).reshape(BB, S, D)


def transformer_block(x, params, *, batch_block=None):
    B, S, D = x.shape
    H, _, Dh = params["W_Q"].shape
    M = params["W_in"].shape[1]
    hdh = H * Dh

    # Default: fold the whole batch into one block (grid=(1,)) -- best on single-TC v5e/v6e.
    # On v7x (2 TensorCores/chip) pass batch_block=1 so the "parallel" grid axis feeds both cores.
    if batch_block is None:
        batch_block = B
    assert B % batch_block == 0
    BB = batch_block

    # ---- host-side weight plumbing: fuse heads, make everything lane-dense, cast to bf16 ----
    wdt = jnp.bfloat16
    w_qkv = jnp.concatenate(
        [jnp.transpose(params[k], (1, 0, 2)).reshape(D, hdh)
         for k in ("W_Q", "W_K", "W_V")], axis=1).astype(wdt)            # (D, 3*H*Dh)
    b_qkv = jnp.concatenate(
        [params[k].reshape(1, hdh) for k in ("b_Q", "b_K", "b_V")],
        axis=1).astype(jnp.float32)                                       # (1, 3*H*Dh)
    w_o = params["W_O"].reshape(hdh, D).astype(wdt)                       # (H*Dh, D)
    b_o = params["b_O"].reshape(1, D).astype(jnp.float32)
    w_in = params["W_in"].astype(wdt)
    b_in = params["b_in"].reshape(1, M).astype(jnp.float32)
    w_out = params["W_out"].astype(wdt)
    b_out = params["b_out"].reshape(1, D).astype(jnp.float32)
    ln1_w = params["ln1_w"].reshape(1, D).astype(jnp.float32)
    ln1_b = params["ln1_b"].reshape(1, D).astype(jnp.float32)
    ln2_w = params["ln2_w"].reshape(1, D).astype(jnp.float32)
    ln2_b = params["ln2_b"].reshape(1, D).astype(jnp.float32)

    def full(shape):
        nd = len(shape)
        return pl.BlockSpec(shape, lambda i, _nd=nd: (0,) * _nd)

    in_specs = [
        pl.BlockSpec((BB, S, D), lambda i: (i, 0, 0)),   # x
        full((1, D)), full((1, D)),                       # ln1 w, b
        full((D, 3 * hdh)), full((1, 3 * hdh)),           # fused QKV w, b
        full((hdh, D)), full((1, D)),                     # W_O, b_O
        full((1, D)), full((1, D)),                       # ln2 w, b
        full((D, M)), full((1, M)),                       # W_in, b_in
        full((M, D)), full((1, D)),                       # W_out, b_out
    ]
    out_specs = pl.BlockSpec((BB, S, D), lambda i: (i, 0, 0))

    kernel = partial(transformer_block_kernel, n_heads=H, d_head=Dh)

    return pl.pallas_call(
        kernel,
        out_shape=jax.ShapeDtypeStruct((B, S, D), jnp.float32),
        grid=(B // BB,),
        in_specs=in_specs,
        out_specs=out_specs,
        compiler_params=pltpu.CompilerParams(
            dimension_semantics=("parallel",)),
    )(
        x, ln1_w, ln1_b, w_qkv, b_qkv, w_o, b_o,
        ln2_w, ln2_b, w_in, b_in, w_out, b_out,
    )


# ---------------- pure-JAX reference for verification ----------------
def transformer_block_ref(x, p):
    def ln(r, w, b):
        mu = r.mean(-1, keepdims=True)
        var = ((r - mu) ** 2).mean(-1, keepdims=True)
        return (r - mu) / jnp.sqrt(var + LN_EPS) * w + b

    n1 = ln(x, p["ln1_w"], p["ln1_b"])
    q = jnp.einsum("bpd,hde->bphe", n1, p["W_Q"]) + p["b_Q"]
    k = jnp.einsum("bpd,hde->bphe", n1, p["W_K"]) + p["b_K"]
    v = jnp.einsum("bpd,hde->bphe", n1, p["W_V"]) + p["b_V"]
    scores = jnp.einsum("bqhe,bkhe->bhqk", q, k) / math.sqrt(D_HEAD)
    S = x.shape[1]
    mask = jnp.arange(S)[None, :] > jnp.arange(S)[:, None]
    scores = jnp.where(mask[None, None], IGNORE, scores)
    probs = jax.nn.softmax(scores, axis=-1)
    z = jnp.einsum("bhqk,bkhe->bqhe", probs, v)
    attn_out = jnp.einsum("bqhe,hed->bqd", z, p["W_O"]) + p["b_O"]
    resid_mid = x + attn_out
    n2 = ln(resid_mid, p["ln2_w"], p["ln2_b"])
    pre = jnp.einsum("bpd,dm->bpm", n2, p["W_in"]) + p["b_in"]
    post = 0.5 * pre * (1.0 + jnp.tanh(math.sqrt(2.0 / math.pi) * (pre + 0.044715 * pre ** 3)))
    mlp_out = jnp.einsum("bpm,md->bpd", post, p["W_out"]) + p["b_out"]
    return resid_mid + mlp_out


if __name__ == "__main__":
    key = jax.random.PRNGKey(0)
    ks = jax.random.split(key, 8)
    init = 0.02

    params = {
        "ln1_w": jnp.ones((D_MODEL,), jnp.float32),
        "ln1_b": jnp.zeros((D_MODEL,), jnp.float32),
        "W_Q": init * jax.random.normal(ks[0], (N_HEADS, D_MODEL, D_HEAD), jnp.float32),
        "W_K": init * jax.random.normal(ks[1], (N_HEADS, D_MODEL, D_HEAD), jnp.float32),
        "W_V": init * jax.random.normal(ks[2], (N_HEADS, D_MODEL, D_HEAD), jnp.float32),
        "W_O": init * jax.random.normal(ks[3], (N_HEADS, D_HEAD, D_MODEL), jnp.float32),
        "b_Q": jnp.zeros((N_HEADS, D_HEAD), jnp.float32),
        "b_K": jnp.zeros((N_HEADS, D_HEAD), jnp.float32),
        "b_V": jnp.zeros((N_HEADS, D_HEAD), jnp.float32),
        "b_O": jnp.zeros((D_MODEL,), jnp.float32),
        "ln2_w": jnp.ones((D_MODEL,), jnp.float32),
        "ln2_b": jnp.zeros((D_MODEL,), jnp.float32),
        "W_in": init * jax.random.normal(ks[4], (D_MODEL, D_MLP), jnp.float32),
        "b_in": jnp.zeros((D_MLP,), jnp.float32),
        "W_out": init * jax.random.normal(ks[5], (D_MLP, D_MODEL), jnp.float32),
        "b_out": jnp.zeros((D_MODEL,), jnp.float32),
    }

    x = jax.random.normal(ks[6], (BATCH, SEQ, D_MODEL), jnp.float32)

    out = transformer_block(x, params)
    out = jax.block_until_ready(out)

    ref = transformer_block_ref(x, params)
    assert out.shape == (BATCH, SEQ, D_MODEL)
    # bf16 MXU operands (f32 accumulate) -> tolerance loosened vs. the all-f32 version
    assert jnp.allclose(out, ref, atol=2e-2, rtol=2e-2), float(jnp.max(jnp.abs(out - ref)))

    print("KERNEL_OK")
</pallas_src>

<mosaic_0001>
module attributes {stable_mosaic.version = 11 : i64} {
  func.func @transformer_block_kernel(%arg0: i32, %arg1: memref<2x16x128xf32, #tpu.memory_space<vmem>>, %arg2: memref<1x128xf32, #tpu.memory_space<vmem>>, %arg3: memref<1x128xf32, #tpu.memory_space<vmem>>, %arg4: memref<128x384xbf16, #tpu.memory_space<vmem>>, %arg5: memref<1x384xf32, #tpu.memory_space<vmem>>, %arg6: memref<128x128xbf16, #tpu.memory_space<vmem>>, %arg7: memref<1x128xf32, #tpu.memory_space<vmem>>, %arg8: memref<1x128xf32, #tpu.memory_space<vmem>>, %arg9: memref<1x128xf32, #tpu.memory_space<vmem>>, %arg10: memref<128x256xbf16, #tpu.memory_space<vmem>>, %arg11: memref<1x256xf32, #tpu.memory_space<vmem>>, %arg12: memref<256x128xbf16, #tpu.memory_space<vmem>>, %arg13: memref<1x128xf32, #tpu.memory_space<vmem>>, %arg14: memref<2x16x128xf32, #tpu.memory_space<vmem>>) attributes {dimension_semantics = [#tpu.dimension_semantics<parallel>], iteration_bounds = array<i64: 1>, scalar_prefetch = 0 : i64, scratch_operands = 0 : i64, tpu.core_type = #tpu.core_type<tc>, window_params = [{transform_indices = @transform_0, window_bounds = array<i64: 2, 16, 128>}, {pipeline_mode = #tpu.pipeline_mode<synchronous>, transform_indices = @transform_1, window_bounds = array<i64: 1, 128>}, {pipeline_mode = #tpu.pipeline_mode<synchronous>, transform_indices = @transform_2, window_bounds = array<i64: 1, 128>}, {pipeline_mode = #tpu.pipeline_mode<synchronous>, transform_indices = @transform_3, window_bounds = array<i64: 128, 384>}, {pipeline_mode = #tpu.pipeline_mode<synchronous>, transform_indices = @transform_4, window_bounds = array<i64: 1, 384>}, {pipeline_mode = #tpu.pipeline_mode<synchronous>, transform_indices = @transform_5, window_bounds = array<i64: 128, 128>}, {pipeline_mode = #tpu.pipeline_mode<synchronous>, transform_indices = @transform_6, window_bounds = array<i64: 1, 128>}, {pipeline_mode = #tpu.pipeline_mode<synchronous>, transform_indices = @transform_7, window_bounds = array<i64: 1, 128>}, {pipeline_mode = #tpu.pipeline_mode<synchronous>, transform_indices = @transform_8, window_bounds = array<i64: 1, 128>}, {pipeline_mode = #tpu.pipeline_mode<synchronous>, transform_indices = @transform_9, window_bounds = array<i64: 128, 256>}, {pipeline_mode = #tpu.pipeline_mode<synchronous>, transform_indices = @transform_10, window_bounds = array<i64: 1, 256>}, {pipeline_mode = #tpu.pipeline_mode<synchronous>, transform_indices = @transform_11, window_bounds = array<i64: 256, 128>}, {pipeline_mode = #tpu.pipeline_mode<synchronous>, transform_indices = @transform_12, window_bounds = array<i64: 1, 128>}, {transform_indices = @transform_13, window_bounds = array<i64: 2, 16, 128>}]} {
    %c0 = arith.constant 0 : index
    %c0_0 = arith.constant 0 : index
    %c0_1 = arith.constant 0 : index
    %0 = vector.load %arg1[%c0, %c0_0, %c0_1] : memref<2x16x128xf32, #tpu.memory_space<vmem>>, vector<2x16x128xf32>
    %1 = vector.shape_cast %0 : vector<2x16x128xf32> to vector<32x128xf32>
    %c0_2 = arith.constant 0 : index
    %c0_3 = arith.constant 0 : index
    %2 = vector.load %arg2[%c0_2, %c0_3] : memref<1x128xf32, #tpu.memory_space<vmem>>, vector<1x128xf32>
    %c0_4 = arith.constant 0 : index
    %c0_5 = arith.constant 0 : index
    %3 = vector.load %arg3[%c0_4, %c0_5] : memref<1x128xf32, #tpu.memory_space<vmem>>, vector<1x128xf32>
    %cst = arith.constant dense<0.000000e+00> : vector<32xf32>
    %4 = vector.multi_reduction <add>, %1, %cst [1] : vector<32x128xf32> to vector<32xf32>
    %5 = vector.shape_cast %4 : vector<32xf32> to vector<32x1xf32>
    %cst_6 = arith.constant 1.280000e+02 : f32
    %6 = vector.broadcast %cst_6 : f32 to vector<32x1xf32>
    %7 = arith.divf %5, %6 : vector<32x1xf32>
    %8 = vector.broadcast %7 : vector<32x1xf32> to vector<32x128xf32>
    %9 = arith.subf %1, %8 : vector<32x128xf32>
    %10 = arith.mulf %9, %9 : vector<32x128xf32>
    %cst_7 = arith.constant dense<0.000000e+00> : vector<32xf32>
    %11 = vector.multi_reduction <add>, %10, %cst_7 [1] : vector<32x128xf32> to vector<32xf32>
    %12 = vector.shape_cast %11 : vector<32xf32> to vector<32x1xf32>
    %cst_8 = arith.constant 1.280000e+02 : f32
    %13 = vector.broadcast %cst_8 : f32 to vector<32x1xf32>
    %14 = arith.divf %12, %13 : vector<32x1xf32>
    %15 = vector.broadcast %7 : vector<32x1xf32> to vector<32x128xf32>
    %16 = arith.subf %1, %15 : vector<32x128xf32>
    %cst_9 = arith.constant 9.99999974E-6 : f32
    %17 = vector.broadcast %cst_9 : f32 to vector<32x1xf32>
    %18 = arith.addf %14, %17 : vector<32x1xf32>
    %19 = math.sqrt %18 : vector<32x1xf32>
    %20 = vector.broadcast %19 : vector<32x1xf32> to vector<32x128xf32>
    %21 = arith.divf %16, %20 : vector<32x128xf32>
    %22 = vector.broadcast %2 : vector<1x128xf32> to vector<32x128xf32>
    %23 = arith.mulf %21, %22 : vector<32x128xf32>
    %24 = vector.broadcast %3 : vector<1x128xf32> to vector<32x128xf32>
    %25 = arith.addf %23, %24 : vector<32x128xf32>
    %26 = arith.truncf %25 : vector<32x128xf32> to vector<32x128xbf16>
    %c0_10 = arith.constant 0 : index
    %c0_11 = arith.constant 0 : index
    %27 = vector.load %arg4[%c0_10, %c0_11] : memref<128x384xbf16, #tpu.memory_space<vmem>>, vector<128x384xbf16>
    %cst_12 = arith.constant dense<0.000000e+00> : vector<32x384xf32>
    %28 = tpu.matmul %26, %27, %cst_12 {dimension_numbers = #tpu.dot_dimension_numbers<[1], [0], [0], [1], [0, 0, 1, 1], [], []>} : vector<32x128xbf16>, vector<128x384xbf16>, vector<32x384xf32> -> vector<32x384xf32>
    %c0_13 = arith.constant 0 : index
    %c0_14 = arith.constant 0 : index
    %29 = vector.load %arg5[%c0_13, %c0_14] : memref<1x384xf32, #tpu.memory_space<vmem>>, vector<1x384xf32>
    %30 = vector.broadcast %29 : vector<1x384xf32> to vector<32x384xf32>
    %31 = arith.addf %28, %30 : vector<32x384xf32>
    %32 = tpu.iota {dimensions = array<i32: 0>} : vector<16x16xi32>
    %33 = tpu.iota {dimensions = array<i32: 1>} : vector<16x16xi32>
    %34 = arith.cmpi sgt, %33, %32 : vector<16x16xi32>
    %35 = vector.shape_cast %34 : vector<16x16xi1> to vector<1x16x16xi1>
    %36 = vector.shape_cast %35 : vector<1x16x16xi1> to vector<1x16x16xi1>
    %37 = vector.broadcast %36 : vector<1x16x16xi1> to vector<4x16x16xi1>
    %38 = vector.extract_strided_slice %31 {offsets = [0, 0], sizes = [16, 384], strides = [1, 1]} : vector<32x384xf32> to vector<16x384xf32>
    %39 = vector.extract_strided_slice %38 {offsets = [0, 0], sizes = [16, 128], strides = [1, 1]} : vector<16x384xf32> to vector<16x128xf32>
    %40 = vector.extract_strided_slice %38 {offsets = [0, 128], sizes = [16, 128], strides = [1, 1]} : vector<16x384xf32> to vector<16x128xf32>
    %41 = vector.extract_strided_slice %38 {offsets = [0, 256], sizes = [16, 128], strides = [1, 1]} : vector<16x384xf32> to vector<16x128xf32>
    %42 = vector.extract_strided_slice %39 {offsets = [0, 0], sizes = [16, 32], strides = [1, 1]} : vector<16x128xf32> to vector<16x32xf32>
    %43 = vector.extract_strided_slice %40 {offsets = [0, 0], sizes = [16, 32], strides = [1, 1]} : vector<16x128xf32> to vector<16x32xf32>
    %44 = tpu.transpose %43, [1, 0] : vector<16x32xf32> -> vector<32x16xf32>
    %cst_15 = arith.constant dense<0.000000e+00> : vector<16x16xf32>
    %45 = tpu.matmul %42, %44, %cst_15 {dimension_numbers = #tpu.dot_dimension_numbers<[1], [0], [0], [1], [0, 0, 1, 1], [], []>} : vector<16x32xf32>, vector<32x16xf32>, vector<16x16xf32> -> vector<16x16xf32>
    %46 = vector.extract_strided_slice %39 {offsets = [0, 32], sizes = [16, 32], strides = [1, 1]} : vector<16x128xf32> to vector<16x32xf32>
    %47 = vector.extract_strided_slice %40 {offsets = [0, 32], sizes = [16, 32], strides = [1, 1]} : vector<16x128xf32> to vector<16x32xf32>
    %48 = tpu.transpose %47, [1, 0] : vector<16x32xf32> -> vector<32x16xf32>
    %cst_16 = arith.constant dense<0.000000e+00> : vector<16x16xf32>
    %49 = tpu.matmul %46, %48, %cst_16 {dimension_numbers = #tpu.dot_dimension_numbers<[1], [0], [0], [1], [0, 0, 1, 1], [], []>} : vector<16x32xf32>, vector<32x16xf32>, vector<16x16xf32> -> vector<16x16xf32>
    %50 = vector.extract_strided_slice %39 {offsets = [0, 64], sizes = [16, 32], strides = [1, 1]} : vector<16x128xf32> to vector<16x32xf32>
    %51 = vector.extract_strided_slice %40 {offsets = [0, 64], sizes = [16, 32], strides = [1, 1]} : vector<16x128xf32> to vector<16x32xf32>
    %52 = tpu.transpose %51, [1, 0] : vector<16x32xf32> -> vector<32x16xf32>
    %cst_17 = arith.constant dense<0.000000e+00> : vector<16x16xf32>
    %53 = tpu.matmul %50, %52, %cst_17 {dimension_numbers = #tpu.dot_dimension_numbers<[1], [0], [0], [1], [0, 0, 1, 1], [], []>} : vector<16x32xf32>, vector<32x16xf32>, vector<16x16xf32> -> vector<16x16xf32>
    %54 = vector.extract_strided_slice %39 {offsets = [0, 96], sizes = [16, 32], strides = [1, 1]} : vector<16x128xf32> to vector<16x32xf32>
    %55 = vector.extract_strided_slice %40 {offsets = [0, 96], sizes = [16, 32], strides = [1, 1]} : vector<16x128xf32> to vector<16x32xf32>
    %56 = tpu.transpose %55, [1, 0] : vector<16x32xf32> -> vector<32x16xf32>
    %cst_18 = arith.constant dense<0.000000e+00> : vector<16x16xf32>
    %57 = tpu.matmul %54, %56, %cst_18 {dimension_numbers = #tpu.dot_dimension_numbers<[1], [0], [0], [1], [0, 0, 1, 1], [], []>} : vector<16x32xf32>, vector<32x16xf32>, vector<16x16xf32> -> vector<16x16xf32>
    %58 = vector.shape_cast %45 : vector<16x16xf32> to vector<1x16x16xf32>
    %59 = vector.shape_cast %49 : vector<16x16xf32> to vector<1x16x16xf32>
    %60 = vector.shape_cast %53 : vector<16x16xf32> to vector<1x16x16xf32>
    %61 = vector.shape_cast %57 : vector<16x16xf32> to vector<1x16x16xf32>
    %62 = tpu.concatenate %58, %59, %60, %61 in 0 : vector<1x16x16xf32>, vector<1x16x16xf32>, vector<1x16x16xf32>, vector<1x16x16xf32> -> vector<4x16x16xf32>
    %cst_19 = arith.constant 0.176776692 : f32
    %63 = vector.broadcast %cst_19 : f32 to vector<4x16x16xf32>
    %64 = arith.mulf %62, %63 : vector<4x16x16xf32>
    %cst_20 = arith.constant -1.000000e+08 : f32
    %65 = vector.broadcast %cst_20 : f32 to vector<4x16x16xf32>
    %66 = arith.select %37, %65, %64 : vector<4x16x16xi1>, vector<4x16x16xf32>
    %cst_21 = arith.constant dense<0xFF800000> : vector<4x16xf32>
    %67 = vector.multi_reduction <maximumf>, %66, %cst_21 [2] : vector<4x16x16xf32> to vector<4x16xf32>
    %68 = vector.shape_cast %67 : vector<4x16xf32> to vector<4x16x1xf32>
    %69 = vector.broadcast %68 : vector<4x16x1xf32> to vector<4x16x16xf32>
    %70 = arith.subf %66, %69 : vector<4x16x16xf32>
    %71 = math.exp %70 : vector<4x16x16xf32>
    %cst_22 = arith.constant dense<0.000000e+00> : vector<4x16xf32>
    %72 = vector.multi_reduction <add>, %71, %cst_22 [2] : vector<4x16x16xf32> to vector<4x16xf32>
    %73 = vector.shape_cast %72 : vector<4x16xf32> to vector<4x16x1xf32>
    %74 = tpu.reciprocal %73 : vector<4x16x1xf32> -> vector<4x16x1xf32>
    %75 = vector.broadcast %74 : vector<4x16x1xf32> to vector<4x16x16xf32>
    %76 = arith.mulf %71, %75 : vector<4x16x16xf32>
    %77 = vector.extract_strided_slice %76 {offsets = [0, 0, 0], sizes = [1, 16, 16], strides = [1, 1, 1]} : vector<4x16x16xf32> to vector<1x16x16xf32>
    %78 = vector.shape_cast %77 : vector<1x16x16xf32> to vector<16x16xf32>
    %79 = vector.extract_strided_slice %41 {offsets = [0, 0], sizes = [16, 32], strides = [1, 1]} : vector<16x128xf32> to vector<16x32xf32>
    %cst_23 = arith.constant dense<0.000000e+00> : vector<16x32xf32>
    %80 = tpu.matmul %78, %79, %cst_23 {dimension_numbers = #tpu.dot_dimension_numbers<[1], [0], [0], [1], [0, 0, 1, 1], [], []>} : vector<16x16xf32>, vector<16x32xf32>, vector<16x32xf32> -> vector<16x32xf32>
    %81 = vector.extract_strided_slice %76 {offsets = [1, 0, 0], sizes = [1, 16, 16], strides = [1, 1, 1]} : vector<4x16x16xf32> to vector<1x16x16xf32>
    %82 = vector.shape_cast %81 : vector<1x16x16xf32> to vector<16x16xf32>
    %83 = vector.extract_strided_slice %41 {offsets = [0, 32], sizes = [16, 32], strides = [1, 1]} : vector<16x128xf32> to vector<16x32xf32>
    %cst_24 = arith.constant dense<0.000000e+00> : vector<16x32xf32>
    %84 = tpu.matmul %82, %83, %cst_24 {dimension_numbers = #tpu.dot_dimension_numbers<[1], [0], [0], [1], [0, 0, 1, 1], [], []>} : vector<16x16xf32>, vector<16x32xf32>, vector<16x32xf32> -> vector<16x32xf32>
    %85 = vector.extract_strided_slice %76 {offsets = [2, 0, 0], sizes = [1, 16, 16], strides = [1, 1, 1]} : vector<4x16x16xf32> to vector<1x16x16xf32>
    %86 = vector.shape_cast %85 : vector<1x16x16xf32> to vector<16x16xf32>
    %87 = vector.extract_strided_slice %41 {offsets = [0, 64], sizes = [16, 32], strides = [1, 1]} : vector<16x128xf32> to vector<16x32xf32>
    %cst_25 = arith.constant dense<0.000000e+00> : vector<16x32xf32>
    %88 = tpu.matmul %86, %87, %cst_25 {dimension_numbers = #tpu.dot_dimension_numbers<[1], [0], [0], [1], [0, 0, 1, 1], [], []>} : vector<16x16xf32>, vector<16x32xf32>, vector<16x32xf32> -> vector<16x32xf32>
    %89 = vector.extract_strided_slice %76 {offsets = [3, 0, 0], sizes = [1, 16, 16], strides = [1, 1, 1]} : vector<4x16x16xf32> to vector<1x16x16xf32>
    %90 = vector.shape_cast %89 : vector<1x16x16xf32> to vector<16x16xf32>
    %91 = vector.extract_strided_slice %41 {offsets = [0, 96], sizes = [16, 32], strides = [1, 1]} : vector<16x128xf32> to vector<16x32xf32>
    %cst_26 = arith.constant dense<0.000000e+00> : vector<16x32xf32>
    %92 = tpu.matmul %90, %91, %cst_26 {dimension_numbers = #tpu.dot_dimension_numbers<[1], [0], [0], [1], [0, 0, 1, 1], [], []>} : vector<16x16xf32>, vector<16x32xf32>, vector<16x32xf32> -> vector<16x32xf32>
    %93 = tpu.concatenate %80, %84, %88, %92 in 1 : vector<16x32xf32>, vector<16x32xf32>, vector<16x32xf32>, vector<16x32xf32> -> vector<16x128xf32>
    %94 = vector.extract_strided_slice %31 {offsets = [16, 0], sizes = [16, 384], strides = [1, 1]} : vector<32x384xf32> to vector<16x384xf32>
    %95 = vector.extract_strided_slice %94 {offsets = [0, 0], sizes = [16, 128], strides = [1, 1]} : vector<16x384xf32> to vector<16x128xf32>
    %96 = vector.extract_strided_slice %94 {offsets = [0, 128], sizes = [16, 128], strides = [1, 1]} : vector<16x384xf32> to vector<16x128xf32>
    %97 = vector.extract_strided_slice %94 {offsets = [0, 256], sizes = [16, 128], strides = [1, 1]} : vector<16x384xf32> to vector<16x128xf32>
    %98 = vector.extract_strided_slice %95 {offsets = [0, 0], sizes = [16, 32], strides = [1, 1]} : vector<16x128xf32> to vector<16x32xf32>
    %99 = vector.extract_strided_slice %96 {offsets = [0, 0], sizes = [16, 32], strides = [1, 1]} : vector<16x128xf32> to vector<16x32xf32>
    %100 = tpu.transpose %99, [1, 0] : vector<16x32xf32> -> vector<32x16xf32>
    %cst_27 = arith.constant dense<0.000000e+00> : vector<16x16xf32>
    %101 = tpu.matmul %98, %100, %cst_27 {dimension_numbers = #tpu.dot_dimension_numbers<[1], [0], [0], [1], [0, 0, 1, 1], [], []>} : vector<16x32xf32>, vector<32x16xf32>, vector<16x16xf32> -> vector<16x16xf32>
    %102 = vector.extract_strided_slice %95 {offsets = [0, 32], sizes = [16, 32], strides = [1, 1]} : vector<16x128xf32> to vector<16x32xf32>
    %103 = vector.extract_strided_slice %96 {offsets = [0, 32], sizes = [16, 32], strides = [1, 1]} : vector<16x128xf32> to vector<16x32xf32>
    %104 = tpu.transpose %103, [1, 0] : vector<16x32xf32> -> vector<32x16xf32>
    %cst_28 = arith.constant dense<0.000000e+00> : vector<16x16xf32>
    %105 = tpu.matmul %102, %104, %cst_28 {dimension_numbers = #tpu.dot_dimension_numbers<[1], [0], [0], [1], [0, 0, 1, 1], [], []>} : vector<16x32xf32>, vector<32x16xf32>, vector<16x16xf32> -> vector<16x16xf32>
    %106 = vector.extract_strided_slice %95 {offsets = [0, 64], sizes = [16, 32], strides = [1, 1]} : vector<16x128xf32> to vector<16x32xf32>
    %107 = vector.extract_strided_slice %96 {offsets = [0, 64], sizes = [16, 32], strides = [1, 1]} : vector<16x128xf32> to vector<16x32xf32>
    %108 = tpu.transpose %107, [1, 0] : vector<16x32xf32> -> vector<32x16xf32>
    %cst_29 = arith.constant dense<0.000000e+00> : vector<16x16xf32>
    %109 = tpu.matmul %106, %108, %cst_29 {dimension_numbers = #tpu.dot_dimension_numbers<[1], [0], [0], [1], [0, 0, 1, 1], [], []>} : vector<16x32xf32>, vector<32x16xf32>, vector<16x16xf32> -> vector<16x16xf32>
    %110 = vector.extract_strided_slice %95 {offsets = [0, 96], sizes = [16, 32], strides = [1, 1]} : vector<16x128xf32> to vector<16x32xf32>
    %111 = vector.extract_strided_slice %96 {offsets = [0, 96], sizes = [16, 32], strides = [1, 1]} : vector<16x128xf32> to vector<16x32xf32>
    %112 = tpu.transpose %111, [1, 0] : vector<16x32xf32> -> vector<32x16xf32>
    %cst_30 = arith.constant dense<0.000000e+00> : vector<16x16xf32>
    %113 = tpu.matmul %110, %112, %cst_30 {dimension_numbers = #tpu.dot_dimension_numbers<[1], [0], [0], [1], [0, 0, 1, 1], [], []>} : vector<16x32xf32>, vector<32x16xf32>, vector<16x16xf32> -> vector<16x16xf32>
    %114 = vector.shape_cast %101 : vector<16x16xf32> to vector<1x16x16xf32>
    %115 = vector.shape_cast %105 : vector<16x16xf32> to vector<1x16x16xf32>
    %116 = vector.shape_cast %109 : vector<16x16xf32> to vector<1x16x16xf32>
    %117 = vector.shape_cast %113 : vector<16x16xf32> to vector<1x16x16xf32>
    %118 = tpu.concatenate %114, %115, %116, %117 in 0 : vector<1x16x16xf32>, vector<1x16x16xf32>, vector<1x16x16xf32>, vector<1x16x16xf32> -> vector<4x16x16xf32>
    %cst_31 = arith.constant 0.176776692 : f32
    %119 = vector.broadcast %cst_31 : f32 to vector<4x16x16xf32>
    %120 = arith.mulf %118, %119 : vector<4x16x16xf32>
    %cst_32 = arith.constant -1.000000e+08 : f32
    %121 = vector.broadcast %cst_32 : f32 to vector<4x16x16xf32>
    %122 = arith.select %37, %121, %120 : vector<4x16x16xi1>, vector<4x16x16xf32>
    %cst_33 = arith.constant dense<0xFF800000> : vector<4x16xf32>
    %123 = vector.multi_reduction <maximumf>, %122, %cst_33 [2] : vector<4x16x16xf32> to vector<4x16xf32>
    %124 = vector.shape_cast %123 : vector<4x16xf32> to vector<4x16x1xf32>
    %125 = vector.broadcast %124 : vector<4x16x1xf32> to vector<4x16x16xf32>
    %126 = arith.subf %122, %125 : vector<4x16x16xf32>
    %127 = math.exp %126 : vector<4x16x16xf32>
    %cst_34 = arith.constant dense<0.000000e+00> : vector<4x16xf32>
    %128 = vector.multi_reduction <add>, %127, %cst_34 [2] : vector<4x16x16xf32> to vector<4x16xf32>
    %129 = vector.shape_cast %128 : vector<4x16xf32> to vector<4x16x1xf32>
    %130 = tpu.reciprocal %129 : vector<4x16x1xf32> -> vector<4x16x1xf32>
    %131 = vector.broadcast %130 : vector<4x16x1xf32> to vector<4x16x16xf32>
    %132 = arith.mulf %127, %131 : vector<4x16x16xf32>
    %133 = vector.extract_strided_slice %132 {offsets = [0, 0, 0], sizes = [1, 16, 16], strides = [1, 1, 1]} : vector<4x16x16xf32> to vector<1x16x16xf32>
    %134 = vector.shape_cast %133 : vector<1x16x16xf32> to vector<16x16xf32>
    %135 = vector.extract_strided_slice %97 {offsets = [0, 0], sizes = [16, 32], strides = [1, 1]} : vector<16x128xf32> to vector<16x32xf32>
    %cst_35 = arith.constant dense<0.000000e+00> : vector<16x32xf32>
    %136 = tpu.matmul %134, %135, %cst_35 {dimension_numbers = #tpu.dot_dimension_numbers<[1], [0], [0], [1], [0, 0, 1, 1], [], []>} : vector<16x16xf32>, vector<16x32xf32>, vector<16x32xf32> -> vector<16x32xf32>
    %137 = vector.extract_strided_slice %132 {offsets = [1, 0, 0], sizes = [1, 16, 16], strides = [1, 1, 1]} : vector<4x16x16xf32> to vector<1x16x16xf32>
    %138 = vector.shape_cast %137 : vector<1x16x16xf32> to vector<16x16xf32>
    %139 = vector.extract_strided_slice %97 {offsets = [0, 32], sizes = [16, 32], strides = [1, 1]} : vector<16x128xf32> to vector<16x32xf32>
    %cst_36 = arith.constant dense<0.000000e+00> : vector<16x32xf32>
    %140 = tpu.matmul %138, %139, %cst_36 {dimension_numbers = #tpu.dot_dimension_numbers<[1], [0], [0], [1], [0, 0, 1, 1], [], []>} : vector<16x16xf32>, vector<16x32xf32>, vector<16x32xf32> -> vector<16x32xf32>
    %141 = vector.extract_strided_slice %132 {offsets = [2, 0, 0], sizes = [1, 16, 16], strides = [1, 1, 1]} : vector<4x16x16xf32> to vector<1x16x16xf32>
    %142 = vector.shape_cast %141 : vector<1x16x16xf32> to vector<16x16xf32>
    %143 = vector.extract_strided_slice %97 {offsets = [0, 64], sizes = [16, 32], strides = [1, 1]} : vector<16x128xf32> to vector<16x32xf32>
    %cst_37 = arith.constant dense<0.000000e+00> : vector<16x32xf32>
    %144 = tpu.matmul %142, %143, %cst_37 {dimension_numbers = #tpu.dot_dimension_numbers<[1], [0], [0], [1], [0, 0, 1, 1], [], []>} : vector<16x16xf32>, vector<16x32xf32>, vector<16x32xf32> -> vector<16x32xf32>
    %145 = vector.extract_strided_slice %132 {offsets = [3, 0, 0], sizes = [1, 16, 16], strides = [1, 1, 1]} : vector<4x16x16xf32> to vector<1x16x16xf32>
    %146 = vector.shape_cast %145 : vector<1x16x16xf32> to vector<16x16xf32>
    %147 = vector.extract_strided_slice %97 {offsets = [0, 96], sizes = [16, 32], strides = [1, 1]} : vector<16x128xf32> to vector<16x32xf32>
    %cst_38 = arith.constant dense<0.000000e+00> : vector<16x32xf32>
    %148 = tpu.matmul %146, %147, %cst_38 {dimension_numbers = #tpu.dot_dimension_numbers<[1], [0], [0], [1], [0, 0, 1, 1], [], []>} : vector<16x16xf32>, vector<16x32xf32>, vector<16x32xf32> -> vector<16x32xf32>
    %149 = tpu.concatenate %136, %140, %144, %148 in 1 : vector<16x32xf32>, vector<16x32xf32>, vector<16x32xf32>, vector<16x32xf32> -> vector<16x128xf32>
    %150 = tpu.concatenate %93, %149 in 0 : vector<16x128xf32>, vector<16x128xf32> -> vector<32x128xf32>
    %151 = arith.truncf %150 : vector<32x128xf32> to vector<32x128xbf16>
    %c0_39 = arith.constant 0 : index
    %c0_40 = arith.constant 0 : index
    %152 = vector.load %arg6[%c0_39, %c0_40] : memref<128x128xbf16, #tpu.memory_space<vmem>>, vector<128x128xbf16>
    %cst_41 = arith.constant dense<0.000000e+00> : vector<32x128xf32>
    %153 = tpu.matmul %151, %152, %cst_41 {dimension_numbers = #tpu.dot_dimension_numbers<[1], [0], [0], [1], [0, 0, 1, 1], [], []>} : vector<32x128xbf16>, vector<128x128xbf16>, vector<32x128xf32> -> vector<32x128xf32>
    %c0_42 = arith.constant 0 : index
    %c0_43 = arith.constant 0 : index
    %154 = vector.load %arg7[%c0_42, %c0_43] : memref<1x128xf32, #tpu.memory_space<vmem>>, vector<1x128xf32>
    %155 = vector.broadcast %154 : vector<1x128xf32> to vector<32x128xf32>
    %156 = arith.addf %153, %155 : vector<32x128xf32>
    %157 = arith.addf %1, %156 : vector<32x128xf32>
    %c0_44 = arith.constant 0 : index
    %c0_45 = arith.constant 0 : index
    %158 = vector.load %arg8[%c0_44, %c0_45] : memref<1x128xf32, #tpu.memory_space<vmem>>, vector<1x128xf32>
    %c0_46 = arith.constant 0 : index
    %c0_47 = arith.constant 0 : index
    %159 = vector.load %arg9[%c0_46, %c0_47] : memref<1x128xf32, #tpu.memory_space<vmem>>, vector<1x128xf32>
    %cst_48 = arith.constant dense<0.000000e+00> : vector<32xf32>
    %160 = vector.multi_reduction <add>, %157, %cst_48 [1] : vector<32x128xf32> to vector<32xf32>
    %161 = vector.shape_cast %160 : vector<32xf32> to vector<32x1xf32>
    %cst_49 = arith.constant 1.280000e+02 : f32
    %162 = vector.broadcast %cst_49 : f32 to vector<32x1xf32>
    %163 = arith.divf %161, %162 : vector<32x1xf32>
    %164 = vector.broadcast %163 : vector<32x1xf32> to vector<32x128xf32>
    %165 = arith.subf %157, %164 : vector<32x128xf32>
    %166 = arith.mulf %165, %165 : vector<32x128xf32>
    %cst_50 = arith.constant dense<0.000000e+00> : vector<32xf32>
    %167 = vector.multi_reduction <add>, %166, %cst_50 [1] : vector<32x128xf32> to vector<32xf32>
    %168 = vector.shape_cast %167 : vector<32xf32> to vector<32x1xf32>
    %cst_51 = arith.constant 1.280000e+02 : f32
    %169 = vector.broadcast %cst_51 : f32 to vector<32x1xf32>
    %170 = arith.divf %168, %169 : vector<32x1xf32>
    %171 = vector.broadcast %163 : vector<32x1xf32> to vector<32x128xf32>
    %172 = arith.subf %157, %171 : vector<32x128xf32>
    %cst_52 = arith.constant 9.99999974E-6 : f32
    %173 = vector.broadcast %cst_52 : f32 to vector<32x1xf32>
    %174 = arith.addf %170, %173 : vector<32x1xf32>
    %175 = math.sqrt %174 : vector<32x1xf32>
    %176 = vector.broadcast %175 : vector<32x1xf32> to vector<32x128xf32>
    %177 = arith.divf %172, %176 : vector<32x128xf32>
    %178 = vector.broadcast %158 : vector<1x128xf32> to vector<32x128xf32>
    %179 = arith.mulf %177, %178 : vector<32x128xf32>
    %180 = vector.broadcast %159 : vector<1x128xf32> to vector<32x128xf32>
    %181 = arith.addf %179, %180 : vector<32x128xf32>
    %182 = arith.truncf %181 : vector<32x128xf32> to vector<32x128xbf16>
    %c0_53 = arith.constant 0 : index
    %c0_54 = arith.constant 0 : index
    %183 = vector.load %arg10[%c0_53, %c0_54] : memref<128x256xbf16, #tpu.memory_space<vmem>>, vector<128x256xbf16>
    %cst_55 = arith.constant dense<0.000000e+00> : vector<32x256xf32>
    %184 = tpu.matmul %182, %183, %cst_55 {dimension_numbers = #tpu.dot_dimension_numbers<[1], [0], [0], [1], [0, 0, 1, 1], [], []>} : vector<32x128xbf16>, vector<128x256xbf16>, vector<32x256xf32> -> vector<32x256xf32>
    %c0_56 = arith.constant 0 : index
    %c0_57 = arith.constant 0 : index
    %185 = vector.load %arg11[%c0_56, %c0_57] : memref<1x256xf32, #tpu.memory_space<vmem>>, vector<1x256xf32>
    %186 = vector.broadcast %185 : vector<1x256xf32> to vector<32x256xf32>
    %187 = arith.addf %184, %186 : vector<32x256xf32>
    %cst_58 = arith.constant 5.000000e-01 : f32
    %188 = vector.broadcast %cst_58 : f32 to vector<32x256xf32>
    %189 = arith.mulf %188, %187 : vector<32x256xf32>
    %cst_59 = arith.constant 4.471500e-02 : f32
    %190 = vector.broadcast %cst_59 : f32 to vector<32x256xf32>
    %191 = arith.mulf %190, %187 : vector<32x256xf32>
    %192 = arith.mulf %191, %187 : vector<32x256xf32>
    %193 = arith.mulf %192, %187 : vector<32x256xf32>
    %194 = arith.addf %187, %193 : vector<32x256xf32>
    %cst_60 = arith.constant 0.797884583 : f32
    %195 = vector.broadcast %cst_60 : f32 to vector<32x256xf32>
    %196 = arith.mulf %195, %194 : vector<32x256xf32>
    %197 = math.tanh %196 : vector<32x256xf32>
    %cst_61 = arith.constant 1.000000e+00 : f32
    %198 = vector.broadcast %cst_61 : f32 to vector<32x256xf32>
    %199 = arith.addf %198, %197 : vector<32x256xf32>
    %200 = arith.mulf %189, %199 : vector<32x256xf32>
    %201 = arith.truncf %200 : vector<32x256xf32> to vector<32x256xbf16>
    %c0_62 = arith.constant 0 : index
    %c0_63 = arith.constant 0 : index
    %202 = vector.load %arg12[%c0_62, %c0_63] : memref<256x128xbf16, #tpu.memory_space<vmem>>, vector<256x128xbf16>
    %cst_64 = arith.constant dense<0.000000e+00> : vector<32x128xf32>
    %203 = tpu.matmul %201, %202, %cst_64 {dimension_numbers = #tpu.dot_dimension_numbers<[1], [0], [0], [1], [0, 0, 1, 1], [], []>} : vector<32x256xbf16>, vector<256x128xbf16>, vector<32x128xf32> -> vector<32x128xf32>
    %c0_65 = arith.constant 0 : index
    %c0_66 = arith.constant 0 : index
    %204 = vector.load %arg13[%c0_65, %c0_66] : memref<1x128xf32, #tpu.memory_space<vmem>>, vector<1x128xf32>
    %205 = vector.broadcast %204 : vector<1x128xf32> to vector<32x128xf32>
    %206 = arith.addf %203, %205 : vector<32x128xf32>
    %207 = arith.addf %157, %206 : vector<32x128xf32>
    %208 = vector.shape_cast %207 : vector<32x128xf32> to vector<2x16x128xf32>
    %c0_67 = arith.constant 0 : index
    %c0_68 = arith.constant 0 : index
    %c0_69 = arith.constant 0 : index
    %209 = vector.load %arg14[%c0_67, %c0_68, %c0_69] : memref<2x16x128xf32, #tpu.memory_space<vmem>>, vector<2x16x128xf32>
    tpu.vector_store %arg14[%c0_67, %c0_68, %c0_69], %208 {strides = array<i32>} : memref<2x16x128xf32, #tpu.memory_space<vmem>>, vector<2x16x128xf32>,
    return
  }
  func.func @transform_0(%arg0: i32) -> (i32, i32, i32) {
    %c0_i32 = arith.constant 0 : i32
    %c0_i32_0 = arith.constant 0 : i32
    %c0_i32_1 = arith.constant 0 : i32
    return %arg0, %c0_i32, %c0_i32_0 : i32, i32, i32
  }
  func.func @transform_1(%arg0: i32) -> (i32, i32) {
    %c0_i32 = arith.constant 0 : i32
    %c0_i32_0 = arith.constant 0 : i32
    %c0_i32_1 = arith.constant 0 : i32
    return %c0_i32, %c0_i32_0 : i32, i32
  }
  func.func @transform_2(%arg0: i32) -> (i32, i32) {
    %c0_i32 = arith.constant 0 : i32
    %c0_i32_0 = arith.constant 0 : i32
    %c0_i32_1 = arith.constant 0 : i32
    return %c0_i32, %c0_i32_0 : i32, i32
  }
  func.func @transform_3(%arg0: i32) -> (i32, i32) {
    %c0_i32 = arith.constant 0 : i32
    %c0_i32_0 = arith.constant 0 : i32
    %c0_i32_1 = arith.constant 0 : i32
    return %c0_i32, %c0_i32_0 : i32, i32
  }
  func.func @transform_4(%arg0: i32) -> (i32, i32) {
    %c0_i32 = arith.constant 0 : i32
    %c0_i32_0 = arith.constant 0 : i32
    %c0_i32_1 = arith.constant 0 : i32
    return %c0_i32, %c0_i32_0 : i32, i32
  }
  func.func @transform_5(%arg0: i32) -> (i32, i32) {
    %c0_i32 = arith.constant 0 : i32
    %c0_i32_0 = arith.constant 0 : i32
    %c0_i32_1 = arith.constant 0 : i32
    return %c0_i32, %c0_i32_0 : i32, i32
  }
  func.func @transform_6(%arg0: i32) -> (i32, i32) {
    %c0_i32 = arith.constant 0 : i32
    %c0_i32_0 = arith.constant 0 : i32
    %c0_i32_1 = arith.constant 0 : i32
    return %c0_i32, %c0_i32_0 : i32, i32
  }
  func.func @transform_7(%arg0: i32) -> (i32, i32) {
    %c0_i32 = arith.constant 0 : i32
    %c0_i32_0 = arith.constant 0 : i32
    %c0_i32_1 = arith.constant 0 : i32
    return %c0_i32, %c0_i32_0 : i32, i32
  }
  func.func @transform_8(%arg0: i32) -> (i32, i32) {
    %c0_i32 = arith.constant 0 : i32
    %c0_i32_0 = arith.constant 0 : i32
    %c0_i32_1 = arith.constant 0 : i32
    return %c0_i32, %c0_i32_0 : i32, i32
  }
  func.func @transform_9(%arg0: i32) -> (i32, i32) {
    %c0_i32 = arith.constant 0 : i32
    %c0_i32_0 = arith.constant 0 : i32
    %c0_i32_1 = arith.constant 0 : i32
    return %c0_i32, %c0_i32_0 : i32, i32
  }
  func.func @transform_10(%arg0: i32) -> (i32, i32) {
    %c0_i32 = arith.constant 0 : i32
    %c0_i32_0 = arith.constant 0 : i32
    %c0_i32_1 = arith.constant 0 : i32
    return %c0_i32, %c0_i32_0 : i32, i32
  }
  func.func @transform_11(%arg0: i32) -> (i32, i32) {
    %c0_i32 = arith.constant 0 : i32
    %c0_i32_0 = arith.constant 0 : i32
    %c0_i32_1 = arith.constant 0 : i32
    return %c0_i32, %c0_i32_0 : i32, i32
  }
  func.func @transform_12(%arg0: i32) -> (i32, i32) {
    %c0_i32 = arith.constant 0 : i32
    %c0_i32_0 = arith.constant 0 : i32
    %c0_i32_1 = arith.constant 0 : i32
    return %c0_i32, %c0_i32_0 : i32, i32
  }
  func.func @transform_13(%arg0: i32) -> (i32, i32, i32) {
    %c0_i32 = arith.constant 0 : i32
    %c0_i32_0 = arith.constant 0 : i32
    %c0_i32_1 = arith.constant 0 : i32
    return %arg0, %c0_i32, %c0_i32_0 : i32, i32, i32
  }
}

</mosaic_0001>

<bundles_post_ra>
// kernel: tpu_custom_call.1
= control target key start
LH: loop header
LB: loop body
LE: loop exit
PB: predicated region body
PF: predicated region fallthrough
CT: control target
= control target key end

     0   :  { %18 = vsyncpa [#allocation3], 0  ;;  %s3743_s0 = inlined_call_operand.hbm [shape: f32[2,16,128], index: 0, kind: input, shape index: {}]   ;;  %s3744_s1 = inlined_call_operand.hbm [shape: f32[1,128], index: 1, kind: input, shape index: {}]   ;;  %s3745_s2 = inlined_call_operand.hbm [shape: f32[1,128], index: 2, kind: input, shape index: {}]   ;;  %s3746_s3 = inlined_call_operand.hbm [shape: bf16[128,384], index: 3, kind: input, shape index: {}]   ;;  %s3747_s4 = inlined_call_operand.vmem [shape: f32[1,384], index: 4, kind: input, shape index: {}]   ;;  %s3748_s5 = inlined_call_operand.hbm [shape: bf16[128,128], index: 5, kind: input, shape index: {}]   ;;  %s3749_s6 = inlined_call_operand.hbm [shape: f32[1,128], index: 6, kind: input, shape index: {}]   ;;  %s3750_s7 = inlined_call_operand.vmem [shape: f32[1,128], index: 7, kind: input, shape index: {}]   ;;  %s3751_s8 = inlined_call_operand.vmem [shape: f32[1,128], index: 8, kind: input, shape index: {}]   ;;  %s3752_s9 = inlined_call_operand.hbm [shape: bf16[128,256], index: 9, kind: input, shape index: {}]   ;;  %s3753_s10 = inlined_call_operand.vmem [shape: f32[1,256], index: 10, kind: input, shape index: {}]   ;;  %s3754_s11 = inlined_call_operand.hbm [shape: bf16[256,128], index: 11, kind: input, shape index: {}]   ;;  %s3755_s12 = inlined_call_operand.vmem [shape: f32[1,128], index: 12, kind: input, shape index: {}]   ;;  %s3756_s13 = inlined_call_operand.hbm [shape: f32[2,16,128], index: 13, kind: output, shape index: {}]  }
   0x1   :  { %19 = vsyncpa [#allocation6], 0 }
   0x2   :  { %20 = vsyncpa [#allocation9], 0 }
   0x3   :  { %21 = vsyncpa [#allocation12], 0 }
   0x4   :  { %22 = vsyncpa [#allocation15], 0  ;;  %s42_s27 = sshll.u32 %s3744_s1, 4  ;;  %s43_s27 = int_to_ptr.hbm [resolvable:$true] %s42_s27 }
   0x5   :  { %23 = vsyncpa [#allocation4], 0  ;;  %s3101_s28 = smov [#allocation5]   ;;  %s63_s15 = sshll.u32 %s3746_s3, 4  ;;  %s64_s15 = int_to_ptr.hbm [resolvable:$true] %s63_s15 }
   0x6   :  { %s44_s29 = sshll.u32 %s3101_s28, 4  ;;  %s3102_s16 = smov [#allocation8]   ;;  %s45_s29 = int_to_ptr.vmem [resolvable:$true] %s44_s29 }
   0x7   :  { %47 = dma.hbm_to_vmem [thread:$0]  %s43_s27, 16, %s45_s29, [#allocation6]  }
   0x8   :  { %s65_s17 = sshll.u32 %s3102_s16, 4  ;;  %s3103_s18 = smov 192   ;;  %s66_s17 = int_to_ptr.vmem [resolvable:$true] %s65_s17 }
   0x9   :  { %s3104_s19 = smov 12   ;;  %s92_s1 = sshll.u32 %s3749_s6, 4  ;;  %s93_s1 = int_to_ptr.hbm [resolvable:$true] %s92_s1 }
   0xa   :  { %71 = dma.hbm_to_vmem [thread:$0]  %s64_s15, 3072, %s66_s17, [#allocation9], %s3103_s18, %s3103_s18, %s3104_s19  }
   0xb   :  { %s3105_s22 = smov [#allocation11]   ;;  %s28_s3 = sshll.u32 %s3743_s0, 4  ;;  %s29_s3 = int_to_ptr.hbm [resolvable:$true] %s28_s3 }
   0xc   :  { %s94_s23 = sshll.u32 %s3105_s22, 4  ;;  %s3106_s26 = smov [#allocation2]   ;;  %s95_s23 = int_to_ptr.vmem [resolvable:$true] %s94_s23 }
   0xd   :  { %97 = dma.hbm_to_vmem [thread:$0]  %s93_s1, 16, %s95_s23, [#allocation12]  }
   0xe   :  { %s30_s27 = sshll.u32 %s3106_s26, 4  ;;  %s3107_s28 = smov 128   ;;  %s31_s27 = int_to_ptr.vmem [resolvable:$true] %s30_s27 }
   0xf   :  { %s3108_s29 = smov 8   ;;  %s53_s14 = sshll.u32 %s3745_s2, 4  ;;  %s54_s14 = int_to_ptr.hbm [resolvable:$true] %s53_s14 }
  0x10   :  { %36 = dma.hbm_to_vmem [thread:$0]  %s29_s3, 512, %s31_s27, [#allocation3], %s3107_s28, %s3107_s28, %s3108_s29  }
  0x11   :  { %s3109_s15 = smov [#allocation7]   ;;  %s78_s18 = sshll.u32 %s3748_s5, 4  ;;  %s79_s18 = int_to_ptr.hbm [resolvable:$true] %s78_s18 }
  0x12   :  { %s55_s16 = sshll.u32 %s3109_s15, 4  ;;  %s3110_s19 = smov [#allocation10]   ;;  %s56_s16 = int_to_ptr.vmem [resolvable:$true] %s55_s16 }
  0x13   :  { %58 = dma.hbm_to_vmem [thread:$0]  %s54_s14, 16, %s56_s16, [#allocation6]  }
  0x14   :  { %s80_s20 = sshll.u32 %s3110_s19, 4  ;;  %s3111_s21 = smov 64   ;;  %s81_s20 = int_to_ptr.vmem [resolvable:$true] %s80_s20 }
  0x15   :  { %s3112_s1 = smov 4   ;;  %s106_s23 = sshll.u32 %s3752_s9, 4  ;;  %s107_s23 = int_to_ptr.hbm [resolvable:$true] %s106_s23 }
  0x16   :  { %86 = dma.hbm_to_vmem [thread:$0]  %s79_s18, 1024, %s81_s20, [#allocation9], %s3111_s21, %s3111_s21, %s3112_s1  }
  0x17   :  { %s3113_s24 = smov [#allocation13]   ;;  %s121_s26 = sshll.u32 %s3754_s11, 4  ;;  %s122_s26 = int_to_ptr.hbm [resolvable:$true] %s121_s26 }
  0x18   :  { %s108_s25 = sshll.u32 %s3113_s24, 4  ;;  %s3114_s27 = smov [#allocation14]   ;;  %s109_s25 = int_to_ptr.vmem [resolvable:$true] %s108_s25 }
  0x19   :  { %114 = dma.hbm_to_vmem [thread:$0]  %s107_s23, 2048, %s109_s25, [#allocation12], %s3107_s28, %s3107_s28, %s3108_s29  }
  0x1a   :  { %s123_s6 = sshll.u32 %s3114_s27, 4  ;;  %s124_s6 = int_to_ptr.vmem [resolvable:$true] %s123_s6 }
  0x1b   :  { %129 = dma.hbm_to_vmem [thread:$0]  %s122_s26, 2048, %s124_s6, [#allocation15], %s3111_s21, %s3111_s21, %s3112_s1  }
  0x1c   :  { %3089 = dma.done.wait [#allocation3], 512  }
  0x1d   :  { %3090 = vsyncadd [#allocation3], 4294966784 }
  0x1e   :  { %3091 = dma.done.wait [#allocation6], 32  }
  0x1f   :  { %3092 = vsyncadd [#allocation6], 4294967264 }
  0x20   :  { %3093 = dma.done.wait [#allocation9], 4096  }
  0x21   :  { %3094 = vsyncadd [#allocation9], 4294963200 }
  0x22   :  { %3095 = dma.done.wait [#allocation12], 2064  }
  0x23   :  { %3096 = vsyncadd [#allocation12], 4294965232 }
  0x24   :  { %3097 = dma.done.wait [#allocation15], 2048  }
  0x25   :  { %3098 = vsyncadd [#allocation15], 4294965248  ;;  %v164_v0 = vld [vmem:[#allocation2] sm:$0xff]  ;;  %v165_v1 = vld [vmem:[#allocation2 + $0x8] sm:$0xff]  ;;  %v3115_v2 = vmov 128.0   ;;  %s3116_s30 = smov 96  }
  0x26   :  { %170 = vadd.xlane.f32.xlu0 %v164_v0  ;;  %2755 = vrcp.f32 %v3115_v2  ;;  %v2387_v17 = vld [vmem:[#allocation8 + $0xa8] sm:$0xf]  ;;  %v2627_v18 = vld [vmem:[#allocation8 + $0xb0] sm:$0xf0]  ;;  %v2626_v19 = vld [vmem:[#allocation8 + $0xac] sm:$0xf] }
  0x27   :  { %v2388_v20 = vor.u32 %v2627_v18, %v2387_v17  ;;  %v2389_v21 = vld [vmem:[#allocation8 + $0xb4] sm:$0xf0]  ;;  %v2395_v22 = vld [vmem:[#allocation8 + $0xb0] sm:$0xf]  ;;  %v2628_v23 = vld [vmem:[#allocation8 + $0xb8] sm:$0xf0] }
  0x28   :  { %v2392_v24 = vor.u32 %v2626_v19, %v2389_v21  ;;  %v2396_v25 = vor.u32 %v2628_v23, %v2395_v22  ;;  %v2375_v26 = vld [vmem:[#allocation8 + $0x90] sm:$0xf]  ;;  %v2624_v27 = vld [vmem:[#allocation8 + $0x98] sm:$0xf0]  ;;  %v2623_v28 = vld [vmem:[#allocation8 + $0x94] sm:$0xf] }
  0x29   :  { %505 = vmatpush.bf16.msra.mxu0 %v2388_v20  ;;  %v2376_v29 = vor.u32 %v2624_v27, %v2375_v26  ;;  %v2377_v30 = vld [vmem:[#allocation8 + $0x9c] sm:$0xf0]  ;;  %v2383_v31 = vld [vmem:[#allocation8 + $0x98] sm:$0xf]  ;;  %v2625_v32 = vld [vmem:[#allocation8 + $0xa0] sm:$0xf0] }
  0x2a   :  { %524 = vmatpush.bf16.msra.mxu1 %v2392_v24  ;;  %543 = vmatpush.bf16.msra.mxu2 %v2396_v25  ;;  %v2380_v33 = vor.u32 %v2623_v28, %v2377_v30  ;;  %v2384_v34 = vor.u32 %v2625_v32, %v2383_v31  ;;  %v2363_v35 = vld [vmem:[#allocation8 + $0x78] sm:$0xf]  ;;  %v2621_v36 = vld [vmem:[#allocation8 + $0x80] sm:$0xf0]  ;;  %v2620_v37 = vld [vmem:[#allocation8 + $0x7c] sm:$0xf] }
  0x2b   :  { %v2364_v39 = vor.u32 %v2621_v36, %v2363_v35  ;;  %v2365_v40 = vld [vmem:[#allocation8 + $0x84] sm:$0xf0]  ;;  %v2371_v41 = vld [vmem:[#allocation8 + $0x80] sm:$0xf]  ;;  %v2622_v42 = vld [vmem:[#allocation8 + $0x88] sm:$0xf0] }
  0x2c   :  { %v2756_v3 = vpop.eup %2755  ;;  %v2368_v44 = vor.u32 %v2620_v37, %v2365_v40  ;;  %v2372_v45 = vor.u32 %v2622_v42, %v2371_v41  ;;  %v2351_v46 = vld [vmem:[#allocation8 + $0x60] sm:$0xf]  ;;  %v2618_v47 = vld [vmem:[#allocation8 + $0x68] sm:$0xf0]  ;;  %v2617_v48 = vld [vmem:[#allocation8 + $0x64] sm:$0xf] }
  0x2d   :  { %v179_v4 = vmul.f32 128.0, %v2756_v3  ;;  %vm183_vm0 = vweird.f32 %v2756_v3  ;;  %506 = vmatpush.bf16.msra.mxu0 %v2376_v29  ;;  %v2353_v49 = vld [vmem:[#allocation8 + $0x6c] sm:$0xf0]  ;;  %v2359_v50 = vld [vmem:[#allocation8 + $0x68] sm:$0xf]  ;;  %v2352_v53 = vor.u32 %v2618_v47, %v2351_v46  ;;  %vm573_vm13 = vcmask 261120  }
  0x2e   :  { %172 = vadd.xlane.f32.xlu0 %v165_v1  ;;  %525 = vmatpush.bf16.msra.mxu1 %v2380_v33  ;;  %v2619_v51 = vld [vmem:[#allocation8 + $0x70] sm:$0xf0]  ;;  %v2356_v54 = vor.u32 %v2617_v48, %v2353_v49  ;;  %v2339_v56 = vld [vmem:[#allocation8 + $0x48] sm:$0xf]  ;;  %v2614_v58 = vld [vmem:[#allocation8 + $0x4c] sm:$0xf] }
  0x2f   :  { %v180_v5 = vsub.f32 1.0, %v179_v4  ;;  %544 = vmatpush.bf16.msra.mxu2 %v2384_v34  ;;  %v2360_v55 = vor.u32 %v2619_v51, %v2359_v50  ;;  %v2615_v57 = vld [vmem:[#allocation8 + $0x50] sm:$0xf0]  ;;  %v2341_v59 = vld [vmem:[#allocation8 + $0x54] sm:$0xf0]  ;;  %vm742_vm15 = vcmask 130048  }
  0x30   :  { %v2347_v60 = vld [vmem:[#allocation8 + $0x50] sm:$0xf]  ;;  %v2616_v61 = vld [vmem:[#allocation8 + $0x58] sm:$0xf0]  ;;  %v2340_v63 = vor.u32 %v2615_v57, %v2339_v56  ;;  %v2315_v18 = vld [vmem:[#allocation8 + $0x18] sm:$0xf] }
  0x31   :  { %v181_v6 = vmul.f32 %v2756_v3, %v180_v5  ;;  %507 = vmatpush.bf16.msra.mxu0 %v2364_v39  ;;  %v2348_v2 = vor.u32 %v2616_v61, %v2347_v60  ;;  %v2612_v4 = vld [vmem:[#allocation8 + $0x38] sm:$0xf0]  ;;  %v2611_v5 = vld [vmem:[#allocation8 + $0x34] sm:$0xf]  ;;  %v2609_v19 = vld [vmem:[#allocation8 + $0x20] sm:$0xf0] }
  0x32   :  { %526 = vmatpush.bf16.msra.mxu1 %v2368_v44  ;;  %v2608_v20 = vld [vmem:[#allocation8 + $0x1c] sm:$0xf]  ;;  %v2317_v22 = vld [vmem:[#allocation8 + $0x24] sm:$0xf0]  ;;  %v2323_v23 = vld [vmem:[#allocation8 + $0x20] sm:$0xf]  ;;  %v2316_v26 = vor.u32 %v2609_v19, %v2315_v18 }
  0x33   :  { %v182_v7 = vadd.f32 %v2756_v3, %v181_v6  ;;  %545 = vmatpush.bf16.msra.mxu2 %v2372_v45  ;;  %v2329_v6 = vld [vmem:[#allocation8 + $0x3c] sm:$0xf0]  ;;  %v2610_v24 = vld [vmem:[#allocation8 + $0x28] sm:$0xf0]  ;;  %v2320_v28 = vor.u32 %v2608_v20, %v2317_v22  ;;  %v2605_v31 = vld [vmem:[#allocation8 + $0x4] sm:$0xf] }
  0x34   :  { %v2303_v27 = vld [vmem:[#allocation8] sm:$0xf]  ;;  %v2324_v29 = vor.u32 %v2610_v24, %v2323_v23  ;;  %v2606_v30 = vld [vmem:[#allocation8 + $0x8] sm:$0xf0]  ;;  %v2305_v32 = vld [vmem:[#allocation8 + $0xc] sm:$0xf0] }
  0x35   :  { %v3223_v8 = vsel %vm183_vm0, %v2756_v3, %v182_v7  ;;  %508 = vmatpush.bf16.msra.mxu0 %v2352_v53  ;;  %v2327_v3 = vld [vmem:[#allocation8 + $0x30] sm:$0xf]  ;;  %v2335_v7 = vld [vmem:[#allocation8 + $0x38] sm:$0xf]  ;;  %v2311_v34 = vld [vmem:[#allocation8 + $0x8] sm:$0xf]  ;;  %v2304_v39 = vor.u32 %v2606_v30, %v2303_v27  ;;  %v2308_v40 = vor.u32 %v2605_v31, %v2305_v32 }
  0x36   :  { %527 = vmatpush.bf16.msra.mxu1 %v2356_v54  ;;  %v2607_v35 = vld [vmem:[#allocation8 + $0x10] sm:$0xf0] }
  0x37   :  { %546 = vmatpush.bf16.msra.mxu2 %v2360_v55  ;;  %v2312_v41 = vor.u32 %v2607_v35, %v2311_v34 }
  0x39   :  { %509 = vmatpush.bf16.msra.mxu0 %v2340_v63 }
  0x3b   :  { %547 = vmatpush.bf16.msra.mxu2 %v2348_v2 }
  0x99   :  { %v171_v9 = vpop.xlane.xlu0 %170 }
  0x9a   :  { %v185_v10 = vmul.f32 %v3223_v8, %v171_v9  ;;  %v2613_v9 = vld [vmem:[#allocation8 + $0x40] sm:$0xf0] }
  0x9b   :  { %v2336_v17 = vor.u32 %v2613_v9, %v2335_v7  ;;  %v3247_v9 = vld [vmem:[#allocation5] ss:$0 sm:$0xff] }
  0x9c   :  { %v3226_v11 = vsub.f32 %v164_v0, %v185_v10 }
  0x9d   :  { %548 = vmatpush.bf16.msra.mxu2 %v2336_v17  ;;  %v3251_v17 = vld [vmem:[#allocation7] ss:$0 sm:$0xff] }
  0x9e   :  { %v193_v12 = vmul.f32 %v3226_v11, %v3226_v11 }
  0xa0   :  { %197 = vadd.xlane.f32.xlu1 %v193_v12 }
  0xa1   :  { %v173_v13 = vpop.xlane.xlu0 %172  ;;  %549 = vmatpush.bf16.msra.mxu2 %v2324_v29 }
  0xa2   :  { %v186_v14 = vmul.f32 %v3223_v8, %v173_v13 }
  0xa4   :  { %v3231_v15 = vsub.f32 %v165_v1, %v186_v14  ;;  %v2344_v1 = vor.u32 %v2614_v58, %v2341_v59  ;;  %v2328_v14 = vor.u32 %v2612_v4, %v2327_v3 }
  0xa5   :  { %550 = vmatpush.bf16.msra.mxu2 %v2312_v41 }
  0xa6   :  { %v194_v16 = vmul.f32 %v3231_v15, %v3231_v15  ;;  %528 = vmatpush.bf16.msra.mxu1 %v2344_v1  ;;  %510 = vmatpush.bf16.msra.mxu0 %v2328_v14 }
  0xa8   :  { %199 = vadd.xlane.f32.xlu1 %v194_v16  ;;  %v2332_v16 = vor.u32 %v2611_v5, %v2329_v6 }
  0xaa   :  { %529 = vmatpush.bf16.msra.mxu1 %v2332_v16  ;;  %511 = vmatpush.bf16.msra.mxu0 %v2316_v26 }
  0xae   :  { %530 = vmatpush.bf16.msra.mxu1 %v2320_v28  ;;  %512 = vmatpush.bf16.msra.mxu0 %v2304_v39 }
  0xb2   :  { %531 = vmatpush.bf16.msra.mxu1 %v2308_v40 }
 0x113   :  { %v198_v38 = vpop.xlane.xlu1 %197 }
 0x114   :  { %v205_v43 = vmul.f32 %v198_v38, %v3223_v8 }
 0x116   :  { %v3236_v52 = vadd.f32 1e-05, %v205_v43 }
 0x118   :  { %2757 = vrsqrt.f32 %v3236_v52  ;;  %vm220_vm1 = vcmp.eq.f32.partialorder %v3236_v52, inf  ;;  %v223_v44 = vand.u32 2147483648, %v3236_v52  ;;  %vm222_vm2 = vcmp.eq.f32.partialorder %v3236_v52, 0.0 }
 0x11b   :  { %v200_v62 = vpop.xlane.xlu1 %199 }
 0x11c   :  { %v206_v0 = vmul.f32 %v200_v62, %v3223_v8 }
 0x11e   :  { %v2758_v10 = vpop.eup %2757  ;;  %v210_v12 = vadd.f32 1e-05, %v206_v0 }
 0x11f   :  { %v214_v13 = vmul.f32 %v2758_v10, %v3236_v52 }
 0x120   :  { %2759 = vrsqrt.f32 %v210_v12  ;;  %vm232_vm3 = vcmp.eq.f32.partialorder %v210_v12, inf  ;;  %v235_v51 = vand.u32 2147483648, %v210_v12  ;;  %vm234_vm4 = vcmp.eq.f32.partialorder %v210_v12, 0.0 }
 0x121   :  { %v215_v21 = vmul.f32 %v2758_v10, %v214_v13 }
 0x123   :  { %v216_v25 = vmul.f32 0.5, %v215_v21  ;;  %v369_v21 = vld [vmem:[%s3747_s4] sm:$0x7]  ;;  %s3117_s4 = smov 32  }
 0x124   :  { %v3259_v22 = vperm.slane %v369_v21, 0  ;;  %v3271_v32 = vperm.slane %v369_v21, 2 }
 0x125   :  { %v217_v33 = vsub.f32 1.5, %v216_v25 }
 0x126   :  { %v2760_v36 = vpop.eup %2759 }
 0x127   :  { %v218_v37 = vmul.f32 %v2758_v10, %v217_v33  ;;  %v226_v38 = vmul.f32 %v2760_v36, %v210_v12 }
 0x129   :  { %v219_v42 = vmul.f32 %v218_v37, %v3236_v52  ;;  %v227_v43 = vmul.f32 %v2760_v36, %v226_v38  ;;  %v167_v37 = vld [vmem:[#allocation2 + $0x18] sm:$0xff]  ;;  %v166_v38 = vld [vmem:[#allocation2 + $0x10] sm:$0xff] }
 0x12b   :  { %v228_v45 = vmul.f32 0.5, %v227_v43  ;;  %v221_v46 = vsel %vm220_vm1, %v3236_v52, %v219_v42 }
 0x12c   :  { %v224_v47 = vsel %vm222_vm2, %v223_v44, %v221_v46 }
 0x12d   :  { %v229_v48 = vsub.f32 1.5, %v228_v45  ;;  %2761 = vrcp.f32 %v224_v47  ;;  %v272_v59 = vand.u32 2147483648, %v224_v47  ;;  %vm266_vm6 = vweird.f32 %v224_v47 }
 0x12e   :  { %v270_v60 = vand.u32 2147483647, %v224_v47 }
 0x12f   :  { %v230_v49 = vmul.f32 %v2760_v36, %v229_v48  ;;  %v273_v0 = vor.u32 1.1754944e-38, %v272_v59 }
 0x130   :  { %vm271_vm8 = vcmp.eq.f32.partialorder %v270_v60, 8.507059e+37 }
 0x131   :  { %v231_v50 = vmul.f32 %v230_v49, %v210_v12 }
 0x133   :  { %v2762_v53 = vpop.eup %2761  ;;  %v233_v54 = vsel %vm232_vm3, %v210_v12, %v231_v50 }
 0x134   :  { %v236_v55 = vsel %vm234_vm4, %v235_v51, %v233_v54  ;;  %v262_v56 = vmul.f32 %v2762_v53, %v224_v47  ;;  %vm267_vm5 = vweird.f32 %v2762_v53 }
 0x135   :  { %2763 = vrcp.f32 %v236_v55  ;;  %vm268_vm7 = vmor %vm266_vm6, %vm267_vm5  ;;  %v287_v3 = vand.u32 2147483648, %v236_v55  ;;  %v285_v5 = vand.u32 2147483647, %v236_v55  ;;  %vm281_vm10 = vweird.f32 %v236_v55 }
 0x136   :  { %v263_v57 = vsub.f32 1.0, %v262_v56 }
 0x137   :  { %v288_v10 = vor.u32 1.1754944e-38, %v287_v3  ;;  %vm286_vm12 = vcmp.eq.f32.partialorder %v285_v5, 8.507059e+37 }
 0x138   :  { %v264_v58 = vmul.f32 %v2762_v53, %v263_v57 }
 0x13a   :  { %v265_v52 = vadd.f32 %v2762_v53, %v264_v58 }
 0x13b   :  { %v2764_v61 = vpop.eup %2763 }
 0x13c   :  { %v269_v62 = vsel %vm268_vm7, %v2762_v53, %v265_v52  ;;  %v277_v63 = vmul.f32 %v2764_v61, %v236_v55  ;;  %vm282_vm9 = vweird.f32 %v2764_v61 }
 0x13d   :  { %v274_v2 = vsel %vm271_vm8, %v273_v0, %v269_v62  ;;  %vm283_vm11 = vmor %vm281_vm10, %vm282_vm9 }
 0x13e   :  { %v278_v1 = vsub.f32 1.0, %v277_v63  ;;  %v275_v6 = vmul.f32 %v274_v2, %v3226_v11  ;;  %v562_v63 = vlaneseq }
 0x140   :  { %v279_v4 = vmul.f32 %v2764_v61, %v278_v1  ;;  %v324_v16 = vmul.f32 %v3247_v9, %v275_v6  ;;  %v563_v1 = vshrl.u32 %v562_v63, 7  ;;  %v566_v2 = vand.u32 127, %v562_v63 }
 0x142   :  { %v280_v7 = vadd.f32 %v2764_v61, %v279_v4  ;;  %v331_v19 = vadd.f32 %v3251_v17, %v324_v16  ;;  %vm3312_vm14 = vcmp.gt.s32.totalorder %v566_v2, %v563_v1 }
 0x144   :  { %v284_v12 = vsel %vm283_vm11, %v2764_v61, %v280_v7  ;;  %v564_v7 = vadd.s32 8, %v563_v1 }
 0x145   :  { %v289_v13 = vsel %vm286_vm12, %v288_v10, %v284_v12 }
 0x146   :  { %v290_v14 = vmul.f32 %v289_v13, %v3231_v15  ;;  %v3261_v15 = vperm.slane %v369_v21, 1  ;;  %vm3324_vm0 = vcmp.gt.s32.totalorder %v566_v2, %v564_v7 }
 0x148   :  { %v325_v18 = vmul.f32 %v3247_v9, %v290_v14 }
 0x14a   :  { %v332_v11 = vadd.f32 %v3251_v17, %v325_v18 }
 0x14c   :  { %v335_v20 = vpack.c.bf16 %v332_v11, %v331_v19 }
 0x14e   :  { %513 = vmatmul.bf16.vlgmr.msra.gmra.mxu0 %v335_v20  ;;  %532 = vmatmul.bf16.vlgmr.msra.gmra.mxu1 %v335_v20 }
 0x14f   :  { %551 = vmatmul.bf16.vlgmr.msra.gmra.mxu2 %v335_v20 }
 0x1cb   :  { %v514_v23 = vpop.f32.mrf.mxu0  ;;  %v533_v24 = vpop.f32.mrf.mxu1 }
 0x1cc   :  { %v515_v25 = vadd.f32 %v514_v23, %v3259_v22  ;;  %v534_v26 = vadd.f32 %v533_v24, %v3261_v15 }
 0x1ce   :  { %613 = vrot.lane.b32.xlu2 %v534_v26, %s3116_s30  ;;  %609 = vrot.lane.b32.xlu0 %v515_v25, %s3116_s30 }
 0x1d2   :  { %v552_v27 = vpop.f32.mrf.mxu2 }
 0x1d3   :  { %v516_v28 = vpop.f32.mrf.mxu0  ;;  %v535_v29 = vpop.f32.mrf.mxu1  ;;  %v553_v34 = vadd.f32 %v552_v27, %v3271_v32 }
 0x1d4   :  { %v517_v30 = vadd.f32 %v516_v28, %v3259_v22  ;;  %v536_v31 = vadd.f32 %v535_v29, %v3261_v15 }
 0x1d6   :  { %2397 = vmatpush.xpose.msk.msra.mxu3 %vm573_vm13, %v536_v31  ;;  %652 = vrot.lane.b32.xlu2 %v534_v26, %s3111_s21 }
 0x1d7   :  { %611 = vrot.lane.b32.xlu1 %v517_v30, %s3116_s30 }
 0x1da   :  { %v554_v33 = vpop.f32.mrf.mxu2  ;;  %2398 = vmatpush.xpose.msk.msra.mxu3 %vm573_vm13, %v534_v26 }
 0x1db   :  { %v555_v35 = vadd.f32 %v554_v33, %v3271_v32 }
 0x1dd   :  { %955 = vmatpush.msrb.mxu1 %v555_v35  ;;  %2399 = vmatmul.msk.f32.vlgmr.msra.gmra.mxu3 %vm573_vm13, %v515_v25  ;;  %v2694_v36 = vpack.i.bf16 %v553_v34, %v555_v35 }
 0x1de   :  { %615 = vrot.lane.b32.xlu2 %v536_v31, %s3116_s30 }
 0x1df   :  { %956 = vmatpush.msrb.mxu1 %v553_v34  ;;  %648 = vrot.lane.b32.xlu1 %v515_v25, %s3111_s21 }
 0x1e5   :  { %2400 = vmatmul.msk.f32.gmra.mxu3 %vm573_vm13, %v517_v30 }
 0x1e6   :  { %654 = vrot.lane.b32.xlu2 %v536_v31, %s3111_s21 }
 0x1e7   :  { %691 = vrot.lane.b32.xlu1 %v534_v26, %s3117_s4 }
 0x1ef   :  { %650 = vrot.lane.b32.xlu1 %v517_v30, %s3111_s21 }
 0x1f7   :  { %693 = vrot.lane.b32.xlu1 %v536_v31, %s3117_s4 }
 0x1f8   :  { %176 = vadd.xlane.f32.xlu0 %v167_v37 }
 0x1ff   :  { %687 = vrot.lane.b32.xlu1 %v515_v25, %s3117_s4 }
 0x20f   :  { %174 = vadd.xlane.f32.xlu2 %v166_v38 }
 0x227   :  { %689 = vrot.lane.b32.xlu2 %v517_v30, %s3117_s4 }
 0x228   :  { %v614_v39 = vpop.permute.xlu2 %613 }
 0x22f   :  { %2695 = vrot.lane.b32.xlu2 %v2694_v36, %s3117_s4 }
 0x230   :  { %v653_v40 = vpop.permute.xlu2 %652 }
 0x238   :  { %v616_v41 = vpop.permute.xlu2 %615 }
 0x239   :  { %2401 = vmatpush.xpose.msk.msrb.mxu3 %vm573_vm13, %v616_v41 }
 0x23d   :  { %2402 = vmatpush.xpose.msk.msrb.mxu3 %vm573_vm13, %v614_v39 }
 0x240   :  { %v655_v42 = vpop.permute.xlu2 %654  ;;  %v610_v43 = vpop.permute.xlu0 %609 }
 0x241   :  { %2403 = vmatmul.msk.f32.vlgmr.msrb.gmra.mxu3 %vm573_vm13, %v610_v43 }
 0x242   :  { %2405 = vmatpush.xpose.msk.msra.mxu3 %vm573_vm13, %v655_v42 }
 0x246   :  { %2406 = vmatpush.xpose.msk.msra.mxu3 %vm573_vm13, %v653_v40 }
 0x249   :  { %v612_v44 = vpop.permute.xlu1 %611 }
 0x24a   :  { %2404 = vmatmul.msk.f32.gmra.mxu3 %vm573_vm13, %v612_v44 }
 0x251   :  { %v649_v45 = vpop.permute.xlu1 %648 }
 0x252   :  { %2407 = vmatmul.msk.f32.vlgmr.msra.gmra.mxu3 %vm573_vm13, %v649_v45 }
 0x259   :  { %v692_v46 = vpop.permute.xlu1 %691 }
 0x260   :  { %v603_v62 = vpop.f32.mrf.mxu3 }
 0x261   :  { %v651_v47 = vpop.permute.xlu1 %650  ;;  %v726_v3 = vmul.f32 0.17677669, %v603_v62 }
 0x262   :  { %2408 = vmatmul.msk.f32.gmra.mxu3 %vm573_vm13, %v651_v47 }
 0x263   :  { %v3318_v5 = vsel %vm3312_vm14, -1e+08, %v726_v3 }
 0x264   :  { %v743_v10 = vsel %vm742_vm15, %v3318_v5, -inf }
 0x268   :  { %v606_v0 = vpop.f32.mrf.mxu3 }
 0x269   :  { %v694_v48 = vpop.permute.xlu1 %693  ;;  %v727_v12 = vmul.f32 0.17677669, %v606_v0 }
 0x26a   :  { %2409 = vmatpush.xpose.msk.msrb.mxu3 %vm573_vm13, %v694_v48 }
 0x26b   :  { %v177_v49 = vpop.xlane.xlu0 %176  ;;  %v3330_v14 = vsel %vm3324_vm0, -1e+08, %v727_v12 }
 0x26c   :  { %v188_v50 = vmul.f32 %v3223_v8, %v177_v49  ;;  %v746_v18 = vsel %vm742_vm15, %v3330_v14, -inf }
 0x26e   :  { %v3298_v51 = vsub.f32 %v167_v37, %v188_v50  ;;  %2410 = vmatpush.xpose.msk.msrb.mxu3 %vm573_vm13, %v692_v46 }
 0x270   :  { %v196_v53 = vmul.f32 %v3298_v51, %v3298_v51 }
 0x271   :  { %v688_v54 = vpop.permute.xlu1 %687 }
 0x272   :  { %2411 = vmatmul.msk.f32.vlgmr.msrb.gmra.mxu3 %vm573_vm13, %v688_v54  ;;  %203 = vadd.xlane.f32.xlu1 %v196_v53 }
 0x282   :  { %v175_v55 = vpop.xlane.xlu2 %174 }
 0x283   :  { %v187_v56 = vmul.f32 %v3223_v8, %v175_v55 }
 0x285   :  { %v3305_v57 = vsub.f32 %v166_v38, %v187_v56 }
 0x287   :  { %v195_v58 = vmul.f32 %v3305_v57, %v3305_v57 }
 0x289   :  { %201 = vadd.xlane.f32.xlu0 %v195_v58 }
 0x28a   :  { %v690_v59 = vpop.permute.xlu2 %689 }
 0x28b   :  { %2690 = vrot.lane.b32.xlu1 %v2694_v36, %s3111_s21  ;;  %2412 = vmatmul.msk.f32.gmra.mxu3 %vm573_vm13, %v690_v59 }
 0x292   :  { %v2696_v52 = vpop.permute.xlu2 %2695 }
 0x293   :  { %v2697_v60 = vunpack.i.l.bf16 %v2696_v52  ;;  %v2698_v61 = vunpack.i.h.bf16 %v2696_v52 }
 0x295   :  { %1062 = vmatpush.msra.mxu3 %v2697_v60 }
 0x297   :  { %1063 = vmatpush.msra.mxu3 %v2698_v61 }
 0x29d   :  { %2700 = vrot.lane.b32.xlu0 %v2694_v36, %s3116_s30 }
 0x2c4   :  { %v3320_v6 = vpop.f32.mrf.mxu3 }
 0x2c7   :  { %744 = vmax.xlane.f32.xlu0 %v743_v10 }
 0x2cd   :  { %v645_v16 = vpop.f32.mrf.mxu3 }
 0x2ce   :  { %v729_v19 = vmul.f32 0.17677669, %v645_v16 }
 0x2cf   :  { %747 = vmax.xlane.f32.xlu0 %v746_v18 }
 0x2d0   :  { %v3336_v11 = vsel %vm3324_vm0, -1e+08, %v729_v19 }
 0x2d1   :  { %v752_v20 = vsel %vm742_vm15, %v3336_v11, -inf }
 0x2d7   :  { %753 = vmax.xlane.f32.xlu0 %v752_v20 }
 0x2e5   :  { %v204_v21 = vpop.xlane.xlu1 %203 }
 0x2e6   :  { %v208_v23 = vmul.f32 %v204_v21, %v3223_v8 }
 0x2e8   :  { %v212_v24 = vadd.f32 1e-05, %v208_v23 }
 0x2ea   :  { %2765 = vrsqrt.f32 %v212_v24  ;;  %vm256_vm1 = vcmp.eq.f32.partialorder %v212_v24, inf  ;;  %v259_v36 = vand.u32 2147483648, %v212_v24  ;;  %vm258_vm2 = vcmp.eq.f32.partialorder %v212_v24, 0.0 }
 0x2f0   :  { %v2766_v25 = vpop.eup %2765 }
 0x2f1   :  { %v250_v26 = vmul.f32 %v2766_v25, %v212_v24 }
 0x2f3   :  { %v251_v27 = vmul.f32 %v2766_v25, %v250_v26 }
 0x2f5   :  { %v252_v28 = vmul.f32 0.5, %v251_v27 }
 0x2f7   :  { %v253_v29 = vsub.f32 1.5, %v252_v28 }
 0x2f9   :  { %v254_v30 = vmul.f32 %v2766_v25, %v253_v29 }
 0x2fb   :  { %v255_v31 = vmul.f32 %v254_v30, %v212_v24 }
 0x2fc   :  { %v202_v33 = vpop.xlane.xlu0 %201 }
 0x2fd   :  { %v207_v34 = vmul.f32 %v202_v33, %v3223_v8  ;;  %v2691_v35 = vpop.permute.xlu1 %2690  ;;  %v257_v38 = vsel %vm256_vm1, %v212_v24, %v255_v31 }
 0x2fe   :  { %v2692_v37 = vunpack.i.l.bf16 %v2691_v35  ;;  %v2693_v40 = vunpack.i.h.bf16 %v2691_v35  ;;  %v260_v41 = vsel %vm258_vm2, %v259_v36, %v257_v38  ;;  %v681_v35 = vpop.f32.mrf.mxu3 }
 0x2ff   :  { %v211_v39 = vadd.f32 1e-05, %v207_v34  ;;  %v317_v62 = vand.u32 2147483648, %v260_v41  ;;  %vm311_vm6 = vweird.f32 %v260_v41  ;;  %v315_v63 = vand.u32 2147483647, %v260_v41 }
 0x300   :  { %1027 = vmatpush.msrb.mxu2 %v2692_v37  ;;  %v730_v37 = vmul.f32 0.17677669, %v681_v35 }
 0x301   :  { %2767 = vrsqrt.f32 %v211_v39  ;;  %vm244_vm3 = vcmp.eq.f32.partialorder %v211_v39, inf  ;;  %v247_v58 = vand.u32 2147483648, %v211_v39  ;;  %vm246_vm4 = vcmp.eq.f32.partialorder %v211_v39, 0.0 }
 0x302   :  { %1028 = vmatpush.msrb.mxu2 %v2693_v40  ;;  %2769 = vrcp.f32 %v260_v41  ;;  %v318_v3 = vor.u32 1.1754944e-38, %v317_v62  ;;  %vm316_vm8 = vcmp.eq.f32.partialorder %v315_v63, 8.507059e+37  ;;  %v3356_v38 = vsel %vm3312_vm14, -1e+08, %v730_v37 }
 0x307   :  { %v2768_v42 = vpop.eup %2767 }
 0x308   :  { %v238_v43 = vmul.f32 %v2768_v42, %v211_v39  ;;  %v2770_v44 = vpop.eup %2769 }
 0x309   :  { %v307_v47 = vmul.f32 %v2770_v44, %v260_v41  ;;  %vm312_vm5 = vweird.f32 %v2770_v44 }
 0x30a   :  { %v239_v45 = vmul.f32 %v2768_v42, %v238_v43  ;;  %vm313_vm7 = vmor %vm311_vm6, %vm312_vm5 }
 0x30b   :  { %v308_v54 = vsub.f32 1.0, %v307_v47 }
 0x30c   :  { %v240_v46 = vmul.f32 0.5, %v239_v45 }
 0x30d   :  { %v309_v60 = vmul.f32 %v2770_v44, %v308_v54 }
 0x30e   :  { %v241_v48 = vsub.f32 1.5, %v240_v46 }
 0x30f   :  { %v2701_v49 = vpop.permute.xlu0 %2700  ;;  %v310_v61 = vadd.f32 %v2770_v44, %v309_v60 }
 0x310   :  { %v242_v50 = vmul.f32 %v2768_v42, %v241_v48  ;;  %v2702_v53 = vunpack.i.l.bf16 %v2701_v49  ;;  %v2703_v56 = vunpack.i.h.bf16 %v2701_v49 }
 0x311   :  { %v314_v2 = vsel %vm313_vm7, %v2770_v44, %v310_v61 }
 0x312   :  { %v243_v55 = vmul.f32 %v242_v50, %v211_v39  ;;  %992 = vmatpush.msra.mxu1 %v2702_v53  ;;  %v319_v12 = vsel %vm316_vm8, %v318_v3, %v314_v2 }
 0x313   :  { %v320_v20 = vmul.f32 %v319_v12, %v3298_v51 }
 0x314   :  { %993 = vmatpush.msra.mxu1 %v2703_v56  ;;  %v245_v59 = vsel %vm244_vm3, %v211_v39, %v243_v55  ;;  %v3358_v39 = vpop.f32.mrf.mxu3 }
 0x315   :  { %v248_v52 = vsel %vm246_vm4, %v247_v58, %v245_v59  ;;  %v327_v26 = vmul.f32 %v3247_v9, %v320_v20 }
 0x316   :  { %2771 = vrcp.f32 %v248_v52  ;;  %v302_v10 = vand.u32 2147483648, %v248_v52  ;;  %v300_v18 = vand.u32 2147483647, %v248_v52  ;;  %vm296_vm10 = vweird.f32 %v248_v52 }
 0x317   :  { %v334_v29 = vadd.f32 %v3251_v17, %v327_v26 }
 0x318   :  { %v303_v21 = vor.u32 1.1754944e-38, %v302_v10  ;;  %vm301_vm12 = vcmp.eq.f32.partialorder %v300_v18, 8.507059e+37 }
 0x31c   :  { %v2772_v0 = vpop.eup %2771 }
 0x31d   :  { %v292_v1 = vmul.f32 %v2772_v0, %v248_v52  ;;  %vm297_vm9 = vweird.f32 %v2772_v0 }
 0x31e   :  { %vm298_vm11 = vmor %vm296_vm10, %vm297_vm9 }
 0x31f   :  { %v293_v7 = vsub.f32 1.0, %v292_v1 }
 0x321   :  { %v294_v16 = vmul.f32 %v2772_v0, %v293_v7 }
 0x323   :  { %v295_v19 = vadd.f32 %v2772_v0, %v294_v16 }
 0x325   :  { %v299_v23 = vsel %vm298_vm11, %v2772_v0, %v295_v19 }
 0x326   :  { %v304_v24 = vsel %vm301_vm12, %v303_v21, %v299_v23 }
 0x327   :  { %v305_v25 = vmul.f32 %v304_v24, %v3305_v57 }
 0x329   :  { %v326_v27 = vmul.f32 %v3247_v9, %v305_v25 }
 0x32b   :  { %v333_v28 = vadd.f32 %v3251_v17, %v326_v27 }
 0x32d   :  { %v336_v30 = vpack.c.bf16 %v334_v29, %v333_v28  ;;  %v731_v28 = vmul.f32 0.17677669, %v3358_v39 }
 0x32f   :  { %518 = vmatmul.bf16.gmra.mxu0 %v336_v30  ;;  %537 = vmatmul.bf16.gmra.mxu1 %v336_v30  ;;  %v739_v35 = vsel %vm3324_vm0, -1e+08, %v731_v28 }
 0x330   :  { %556 = vmatmul.bf16.gmra.mxu2 %v336_v30  ;;  %v728_v30 = vmul.f32 0.17677669, %v3320_v6 }
 0x33a   :  { %v745_v51 = vpop.xlane.xlu0 %744 }
 0x33b   :  { %v767_v31 = vsub.f32 %v3318_v5, %v745_v51  ;;  %v755_v5 = vsel %vm742_vm15, %v3356_v38, -inf }
 0x33d   :  { %v775_v33 = vmul.f32 1.442695, %v767_v31 }
 0x33f   :  { %2773 = vpow2.f32 %v775_v33 }
 0x342   :  { %v748_v34 = vpop.xlane.xlu0 %747 }
 0x343   :  { %v768_v36 = vsub.f32 %v3330_v14, %v748_v34  ;;  %v720_v14 = vpop.f32.mrf.mxu3 }
 0x344   :  { %v732_v42 = vmul.f32 0.17677669, %v720_v14 }
 0x345   :  { %v3349_v57 = vpop.eup %2773  ;;  %v777_v17 = vmul.f32 1.442695, %v768_v36  ;;  %v758_v36 = vsel %vm742_vm15, %v739_v35, -inf }
 0x346   :  { %v791_v9 = vsel %vm742_vm15, %v3349_v57, 0.0  ;;  %v3368_v43 = vsel %vm3312_vm14, -1e+08, %v732_v42 }
 0x347   :  { %792 = vadd.xlane.f32.xlu0 %v791_v9  ;;  %2775 = vpow2.f32 %v777_v17  ;;  %v761_v45 = vsel %vm742_vm15, %v3368_v43, -inf }
 0x34a   :  { %v3383_v53 = vpop.xlane.xlu0 %753 }
 0x34b   :  { %v723_v44 = vpop.f32.mrf.mxu3 }
 0x34c   :  { %v733_v46 = vmul.f32 0.17677669, %v723_v44 }
 0x34d   :  { %v3362_v40 = vpop.eup %2775 }
 0x34e   :  { %v794_v41 = vsel %vm742_vm15, %v3362_v40, 0.0  ;;  %v3374_v47 = vsel %vm3324_vm0, -1e+08, %v733_v46 }
 0x34f   :  { %756 = vmax.xlane.f32.xlu0 %v755_v5  ;;  %v764_v48 = vsel %vm742_vm15, %v3374_v47, -inf }
 0x357   :  { %795 = vadd.xlane.f32.xlu0 %v794_v41 }
 0x35f   :  { %762 = vmax.xlane.f32.xlu0 %v761_v45 }
 0x367   :  { %765 = vmax.xlane.f32.xlu0 %v764_v48 }
 0x3ac   :  { %v538_v49 = vpop.f32.mrf.mxu1  ;;  %v519_v58 = vpop.f32.mrf.mxu0 }
 0x3ad   :  { %v3379_v50 = vadd.f32 %v538_v49, %v3261_v15  ;;  %v3403_v61 = vadd.f32 %v519_v58, %v3259_v22 }
 0x3af   :  { %1220 = vrot.lane.b32.xlu0 %v3379_v50, %s3117_s4 }
 0x3b3   :  { %v557_v54 = vpop.f32.mrf.mxu2 }
 0x3b4   :  { %v540_v55 = vpop.f32.mrf.mxu1  ;;  %v558_v60 = vadd.f32 %v557_v54, %v3271_v32 }
 0x3b5   :  { %v3386_v56 = vadd.f32 %v540_v55, %v3261_v15 }
 0x3b7   :  { %1222 = vrot.lane.b32.xlu2 %v3386_v56, %s3117_s4  ;;  %1183 = vrot.lane.b32.xlu1 %v3386_v56, %s3111_s21 }
 0x3b8   :  { %2421 = vmatpush.xpose.msk.msrb.mxu0 %vm573_vm13, %v3386_v56  ;;  %2669 = vmatpush.xpose.msk.msra.mxu2 %vm573_vm13, %v3386_v56 }
 0x3ba   :  { %v793_v59 = vpop.xlane.xlu0 %792 }
 0x3bb   :  { %v559_v52 = vpop.f32.mrf.mxu2  ;;  %2777 = vrcp.f32 %v793_v59  ;;  %v826_v2 = vand.u32 2147483648, %v793_v59  ;;  %v824_v7 = vand.u32 2147483647, %v793_v59  ;;  %vm820_vm2 = vweird.f32 %v793_v59 }
 0x3bc   :  { %v560_v15 = vadd.f32 %v559_v52, %v3271_v32  ;;  %2422 = vmatpush.xpose.msk.msrb.mxu0 %vm573_vm13, %v3379_v50  ;;  %2670 = vmatpush.xpose.msk.msra.mxu2 %vm573_vm13, %v3379_v50  ;;  %v770_v52 = vsub.f32 %v3336_v11, %v3383_v53 }
 0x3bd   :  { %v827_v12 = vor.u32 1.1754944e-38, %v826_v2  ;;  %vm825_vm4 = vcmp.eq.f32.partialorder %v824_v7, 8.507059e+37 }
 0x3be   :  { %v3405_v62 = vpack.i.bf16 %v558_v60, %v560_v15 }
 0x3bf   :  { %2423 = vmatmul.msk.f32.vlgmr.msrb.gmra.mxu0 %vm573_vm13, %v3403_v61 }
 0x3c0   :  { %1483 = vmatpush.msra.mxu0 %v560_v15 }
 0x3c1   :  { %v2778_v63 = vpop.eup %2777 }
 0x3c2   :  { %1484 = vmatpush.msra.mxu0 %v558_v60  ;;  %v816_v0 = vmul.f32 %v2778_v63, %v793_v59  ;;  %v757_v1 = vpop.xlane.xlu0 %756  ;;  %vm821_vm1 = vweird.f32 %v2778_v63 }
 0x3c3   :  { %vm822_vm3 = vmor %vm820_vm2, %vm821_vm1  ;;  %v771_v17 = vsub.f32 %v3356_v38, %v757_v1 }
 0x3c4   :  { %v817_v32 = vsub.f32 1.0, %v816_v0 }
 0x3c5   :  { %v783_v39 = vmul.f32 1.442695, %v771_v17 }
 0x3c6   :  { %v818_v3 = vmul.f32 %v2778_v63, %v817_v32 }
 0x3c8   :  { %v819_v10 = vadd.f32 %v2778_v63, %v818_v3 }
 0x3ca   :  { %v796_v16 = vpop.xlane.xlu0 %795  ;;  %v823_v18 = vsel %vm822_vm3, %v2778_v63, %v819_v10 }
 0x3cb   :  { %2779 = vrcp.f32 %v796_v16  ;;  %v828_v19 = vsel %vm825_vm4, %v827_v12, %v823_v18  ;;  %v840_v25 = vand.u32 2147483648, %v796_v16  ;;  %v838_v27 = vand.u32 2147483647, %v796_v16 }
 0x3cc   :  { %v927_v20 = vmul.f32 %v3349_v57, %v828_v19  ;;  %vm834_vm6 = vweird.f32 %v796_v16  ;;  %v736_v57 = vsel %vm3312_vm14, -1e+08, %v728_v30  ;;  %2781 = vpow2.f32 %v783_v39 }
 0x3cd   :  { %v841_v51 = vor.u32 1.1754944e-38, %v840_v25  ;;  %vm839_vm8 = vcmp.eq.f32.partialorder %v838_v27, 8.507059e+37  ;;  %v749_v6 = vsel %vm742_vm15, %v736_v57, -inf }
 0x3ce   :  { %2413 = vmatmul.msk.f32.vlgmr.msrb.gmra.mxu1 %vm742_vm15, %v927_v20 }
 0x3d1   :  { %v2780_v21 = vpop.eup %2779 }
 0x3d2   :  { %v830_v23 = vmul.f32 %v2780_v21, %v796_v16  ;;  %vm835_vm5 = vweird.f32 %v2780_v21  ;;  %v763_v9 = vpop.xlane.xlu0 %762  ;;  %v3428_v41 = vpop.eup %2781 }
 0x3d3   :  { %vm836_vm7 = vmor %vm834_vm6, %vm835_vm5  ;;  %v803_v44 = vsel %vm742_vm15, %v3428_v41, 0.0 }
 0x3d4   :  { %v831_v24 = vsub.f32 1.0, %v830_v23 }
 0x3d6   :  { %v832_v26 = vmul.f32 %v2780_v21, %v831_v24 }
 0x3d8   :  { %v833_v29 = vadd.f32 %v2780_v21, %v832_v26 }
 0x3da   :  { %v837_v31 = vsel %vm836_vm7, %v2780_v21, %v833_v29  ;;  %v766_v5 = vpop.xlane.xlu0 %765 }
 0x3db   :  { %v842_v33 = vsel %vm839_vm8, %v841_v51, %v837_v31  ;;  %v774_v53 = vsub.f32 %v3374_v47, %v766_v5 }
 0x3dc   :  { %v928_v34 = vmul.f32 %v3362_v40, %v842_v33  ;;  %v773_v40 = vsub.f32 %v3368_v43, %v763_v9  ;;  %v521_v43 = vpop.f32.mrf.mxu0 }
 0x3dd   :  { %v3440_v46 = vadd.f32 %v521_v43, %v3259_v22  ;;  %v781_v22 = vmul.f32 1.442695, %v770_v52  ;;  %v789_v3 = vmul.f32 1.442695, %v774_v53 }
 0x3de   :  { %2414 = vmatmul.msk.f32.gmra.mxu1 %vm742_vm15, %v928_v34  ;;  %v787_v14 = vmul.f32 1.442695, %v773_v40 }
 0x3e0   :  { %759 = vmax.xlane.f32.xlu2 %v758_v36  ;;  %2783 = vpow2.f32 %v787_v14 }
 0x3e1   :  { %750 = vmax.xlane.f32.xlu1 %v749_v6 }
 0x3e6   :  { %v3433_v45 = vpop.eup %2783 }
 0x3e7   :  { %v809_v38 = vsel %vm742_vm15, %v3433_v45, 0.0 }
 0x3f8   :  { %1177 = vrot.lane.b32.xlu2 %v3403_v61, %s3111_s21 }
 0x3fa   :  { %1181 = vrot.lane.b32.xlu1 %v3379_v50, %s3111_s21 }
 0x411   :  { %v1223_v37 = vpop.permute.xlu2 %1222 }
 0x412   :  { %2433 = vmatpush.xpose.msk.msrb.mxu3 %vm573_vm13, %v1223_v37 }
 0x421   :  { %v1221_v42 = vpop.permute.xlu0 %1220 }
 0x422   :  { %2434 = vmatpush.xpose.msk.msrb.mxu3 %vm573_vm13, %v1221_v42 }
 0x424   :  { %804 = vadd.xlane.f32.xlu1 %v803_v44 }
 0x429   :  { %v1184_v48 = vpop.permute.xlu1 %1183 }
 0x42c   :  { %810 = vadd.xlane.f32.xlu1 %v809_v38 }
 0x445   :  { %1216 = vrot.lane.b32.xlu1 %v3403_v61, %s3117_s4 }
 0x44d   :  { %1179 = vrot.lane.b32.xlu1 %v3440_v46, %s3111_s21 }
 0x453   :  { %v760_v49 = vpop.xlane.xlu2 %759 }
 0x454   :  { %v772_v54 = vsub.f32 %v739_v35, %v760_v49  ;;  %v751_v55 = vpop.xlane.xlu1 %750 }
 0x455   :  { %v769_v58 = vsub.f32 %v736_v57, %v751_v55  ;;  %1140 = vrot.lane.b32.xlu1 %v3440_v46, %s3116_s30 }
 0x456   :  { %v785_v59 = vmul.f32 1.442695, %v772_v54 }
 0x457   :  { %v779_v60 = vmul.f32 1.442695, %v769_v58 }
 0x458   :  { %2785 = vpow2.f32 %v785_v59 }
 0x459   :  { %2787 = vpow2.f32 %v779_v60 }
 0x45a   :  { %2789 = vpow2.f32 %v781_v22 }
 0x45b   :  { %2791 = vpow2.f32 %v789_v3  ;;  %v1178_v6 = vpop.permute.xlu2 %1177 }
 0x45e   :  { %v3448_v15 = vpop.eup %2785 }
 0x45f   :  { %v3450_v63 = vpop.eup %2787  ;;  %v806_v0 = vsel %vm742_vm15, %v3448_v15, 0.0 }
 0x460   :  { %807 = vadd.xlane.f32.xlu2 %v806_v0  ;;  %v797_v1 = vsel %vm742_vm15, %v3450_v63, 0.0  ;;  %v3456_v32 = vpop.eup %2789 }
 0x461   :  { %798 = vadd.xlane.f32.xlu0 %v797_v1  ;;  %v800_v11 = vsel %vm742_vm15, %v3456_v32, 0.0  ;;  %v3467_v10 = vpop.eup %2791 }
 0x469   :  { %801 = vadd.xlane.f32.xlu0 %v800_v11 }
 0x46c   :  { %v1182_v2 = vpop.permute.xlu1 %1181 }
 0x478   :  { %1142 = vrot.lane.b32.xlu2 %v3379_v50, %s3116_s30  ;;  %v812_v50 = vsel %vm742_vm15, %v3467_v10, 0.0 }
 0x47d   :  { %1144 = vrot.lane.b32.xlu0 %v3386_v56, %s3116_s30 }
 0x485   :  { %1218 = vrot.lane.b32.xlu0 %v3440_v46, %s3117_s4 }
 0x497   :  { %v805_v7 = vpop.xlane.xlu1 %804 }
 0x498   :  { %2793 = vrcp.f32 %v805_v7  ;;  %v882_v19 = vand.u32 2147483648, %v805_v7  ;;  %v880_v47 = vand.u32 2147483647, %v805_v7  ;;  %vm876_vm10 = vweird.f32 %v805_v7 }
 0x49a   :  { %v883_v24 = vor.u32 1.1754944e-38, %v882_v19  ;;  %vm881_vm12 = vcmp.eq.f32.partialorder %v880_v47, 8.507059e+37 }
 0x49e   :  { %v2794_v12 = vpop.eup %2793 }
 0x49f   :  { %v872_v16 = vmul.f32 %v2794_v12, %v805_v7  ;;  %v811_v18 = vpop.xlane.xlu1 %810  ;;  %vm877_vm9 = vweird.f32 %v2794_v12 }
 0x4a0   :  { %2795 = vrcp.f32 %v811_v18  ;;  %vm878_vm11 = vmor %vm876_vm10, %vm877_vm9  ;;  %v910_v30 = vand.u32 2147483648, %v811_v18  ;;  %v908_v31 = vand.u32 2147483647, %v811_v18  ;;  %vm904_vm2 = vweird.f32 %v811_v18 }
 0x4a1   :  { %v873_v56 = vsub.f32 1.0, %v872_v16  ;;  %813 = vadd.xlane.f32.xlu2 %v812_v50 }
 0x4a2   :  { %v911_v34 = vor.u32 1.1754944e-38, %v910_v30  ;;  %vm909_vm4 = vcmp.eq.f32.partialorder %v908_v31, 8.507059e+37 }
 0x4a3   :  { %v874_v20 = vmul.f32 %v2794_v12, %v873_v56 }
 0x4a5   :  { %v875_v21 = vadd.f32 %v2794_v12, %v874_v20 }
 0x4a6   :  { %v2796_v23 = vpop.eup %2795 }
 0x4a7   :  { %v900_v25 = vmul.f32 %v2796_v23, %v811_v18  ;;  %v879_v26 = vsel %vm878_vm11, %v2794_v12, %v875_v21  ;;  %vm905_vm1 = vweird.f32 %v2796_v23 }
 0x4a8   :  { %v884_v27 = vsel %vm881_vm12, %v883_v24, %v879_v26  ;;  %vm906_vm3 = vmor %vm904_vm2, %vm905_vm1 }
 0x4a9   :  { %v901_v28 = vsub.f32 1.0, %v900_v25  ;;  %v931_v29 = vmul.f32 %v3428_v41, %v884_v27 }
 0x4ab   :  { %v902_v51 = vmul.f32 %v2796_v23, %v901_v28  ;;  %2417 = vmatmul.msk.f32.vlgmr.msrb.gmra.mxu2 %vm742_vm15, %v931_v29 }
 0x4ac   :  { %2429 = vmatpush.xpose.msk.msrb.mxu2 %vm573_vm13, %v1184_v48 }
 0x4ad   :  { %v903_v33 = vadd.f32 %v2796_v23, %v902_v51 }
 0x4af   :  { %v907_v35 = vsel %vm906_vm3, %v2796_v23, %v903_v33 }
 0x4b0   :  { %v912_v57 = vsel %vm909_vm4, %v911_v34, %v907_v35  ;;  %2430 = vmatpush.xpose.msk.msrb.mxu2 %vm573_vm13, %v1182_v2  ;;  %v3497_v35 = vpop.f32.mrf.mxu1 }
 0x4b1   :  { %v933_v36 = vmul.f32 %v3433_v45, %v912_v57 }
 0x4b3   :  { %2419 = vmatmul.msk.f32.vlgmr.msra.gmra.mxu3 %vm742_vm15, %v933_v36 }
 0x4b7   :  { %v1217_v19 = vpop.permute.xlu1 %1216 }
 0x4b8   :  { %v3499_v57 = vpop.f32.mrf.mxu1 }
 0x4b9   :  { %1138 = vrot.lane.b32.xlu2 %v3403_v61, %s3116_s30 }
 0x4bf   :  { %v1180_v47 = vpop.permute.xlu1 %1179 }
 0x4c7   :  { %v1141_v30 = vpop.permute.xlu1 %1140 }
 0x4d3   :  { %v808_v9 = vpop.xlane.xlu2 %807 }
 0x4d4   :  { %2797 = vrcp.f32 %v808_v9  ;;  %v799_v37 = vpop.xlane.xlu0 %798  ;;  %v896_v42 = vand.u32 2147483648, %v808_v9  ;;  %v894_v43 = vand.u32 2147483647, %v808_v9  ;;  %vm890_vm7 = vweird.f32 %v808_v9 }
 0x4d5   :  { %2799 = vrcp.f32 %v799_v37  ;;  %v854_v38 = vand.u32 2147483648, %v799_v37  ;;  %v852_v61 = vand.u32 2147483647, %v799_v37  ;;  %vm848_vm8 = vweird.f32 %v799_v37 }
 0x4d6   :  { %v897_v54 = vor.u32 1.1754944e-38, %v896_v42  ;;  %vm895_vm11 = vcmp.eq.f32.partialorder %v894_v43, 8.507059e+37 }
 0x4d7   :  { %v855_v59 = vor.u32 1.1754944e-38, %v854_v38  ;;  %vm853_vm12 = vcmp.eq.f32.partialorder %v852_v61, 8.507059e+37 }
 0x4da   :  { %v2798_v17 = vpop.eup %2797 }
 0x4db   :  { %v2800_v39 = vpop.eup %2799  ;;  %v886_v5 = vmul.f32 %v2798_v17, %v808_v9  ;;  %vm891_vm5 = vweird.f32 %v2798_v17  ;;  %v1143_v20 = vpop.permute.xlu2 %1142 }
 0x4dc   :  { %v844_v40 = vmul.f32 %v2800_v39, %v799_v37  ;;  %v802_v14 = vpop.xlane.xlu0 %801  ;;  %vm849_vm6 = vweird.f32 %v2800_v39  ;;  %vm892_vm9 = vmor %vm890_vm7, %vm891_vm5 }
 0x4dd   :  { %v887_v41 = vsub.f32 1.0, %v886_v5  ;;  %2801 = vrcp.f32 %v802_v14  ;;  %vm850_vm10 = vmor %vm848_vm8, %vm849_vm6  ;;  %v868_v3 = vand.u32 2147483648, %v802_v14  ;;  %v866_v12 = vand.u32 2147483647, %v802_v14 }
 0x4de   :  { %v845_v44 = vsub.f32 1.0, %v844_v40  ;;  %vm862_vm2 = vweird.f32 %v802_v14 }
 0x4df   :  { %v888_v45 = vmul.f32 %v2798_v17, %v887_v41  ;;  %v869_v18 = vor.u32 1.1754944e-38, %v868_v3  ;;  %vm867_vm4 = vcmp.eq.f32.partialorder %v866_v12, 8.507059e+37  ;;  %v1132_v3 = vpop.f32.mrf.mxu0 }
 0x4e0   :  { %v846_v48 = vmul.f32 %v2800_v39, %v845_v44 }
 0x4e1   :  { %v889_v49 = vadd.f32 %v2798_v17, %v888_v45 }
 0x4e2   :  { %v847_v55 = vadd.f32 %v2800_v39, %v846_v48 }
 0x4e3   :  { %v2802_v58 = vpop.eup %2801  ;;  %v893_v52 = vsel %vm892_vm9, %v2798_v17, %v889_v49 }
 0x4e4   :  { %v851_v60 = vsel %vm850_vm10, %v2800_v39, %v847_v55  ;;  %v858_v22 = vmul.f32 %v2802_v58, %v802_v14  ;;  %v898_v0 = vsel %vm895_vm11, %v897_v54, %v893_v52  ;;  %vm863_vm1 = vweird.f32 %v2802_v58 }
 0x4e5   :  { %v856_v1 = vsel %vm853_vm12, %v855_v59, %v851_v60  ;;  %v932_v11 = vmul.f32 %v3448_v15, %v898_v0  ;;  %vm864_vm3 = vmor %vm862_vm2, %vm863_vm1 }
 0x4e6   :  { %v859_v53 = vsub.f32 1.0, %v858_v22  ;;  %v929_v2 = vmul.f32 %v3450_v63, %v856_v1 }
 0x4e7   :  { %2418 = vmatmul.msk.f32.gmra.mxu2 %vm742_vm15, %v932_v11 }
 0x4e8   :  { %v860_v7 = vmul.f32 %v2802_v58, %v859_v53  ;;  %2415 = vmatmul.msk.f32.vlgmr.msra.gmra.mxu1 %vm742_vm15, %v929_v2 }
 0x4ea   :  { %v861_v16 = vadd.f32 %v2802_v58, %v860_v7 }
 0x4ec   :  { %v865_v50 = vsel %vm864_vm3, %v2802_v58, %v861_v16 }
 0x4ed   :  { %v870_v56 = vsel %vm867_vm4, %v869_v18, %v865_v50  ;;  %v1255_v18 = vmul.f32 0.17677669, %v1132_v3 }
 0x4ee   :  { %v930_v15 = vmul.f32 %v3456_v32, %v870_v56 }
 0x4ef   :  { %2424 = vmatmul.msk.f32.vlgmr.msra.gmra.mxu2 %vm573_vm13, %v3440_v46  ;;  %v1145_v63 = vpop.permute.xlu0 %1144  ;;  %v3539_v56 = vsel %vm3312_vm14, -1e+08, %v1255_v18 }
 0x4f0   :  { %2416 = vmatmul.msk.f32.gmra.mxu1 %vm742_vm15, %v930_v15 }
 0x4f1   :  { %2425 = vmatpush.xpose.msk.msrb.mxu1 %vm573_vm13, %v1145_v63  ;;  %v1271_v63 = vsel %vm742_vm15, %v3539_v56, -inf }
 0x4f5   :  { %2426 = vmatpush.xpose.msk.msrb.mxu1 %vm573_vm13, %v1143_v20 }
 0x4f7   :  { %2431 = vmatmul.msk.f32.vlgmr.msrb.gmra.mxu2 %vm573_vm13, %v1178_v6  ;;  %v1219_v34 = vpop.permute.xlu0 %1218 }
 0x4ff   :  { %2432 = vmatmul.msk.f32.gmra.mxu2 %vm573_vm13, %v1180_v47 }
 0x514   :  { %v814_v21 = vpop.xlane.xlu2 %813 }
 0x515   :  { %2803 = vrcp.f32 %v814_v21  ;;  %v924_v25 = vand.u32 2147483648, %v814_v21  ;;  %v922_v27 = vand.u32 2147483647, %v814_v21  ;;  %vm918_vm6 = vweird.f32 %v814_v21 }
 0x517   :  { %v925_v29 = vor.u32 1.1754944e-38, %v924_v25  ;;  %vm923_vm8 = vcmp.eq.f32.partialorder %v922_v27, 8.507059e+37 }
 0x51b   :  { %v2804_v32 = vpop.eup %2803 }
 0x51c   :  { %v914_v23 = vmul.f32 %v2804_v32, %v814_v21  ;;  %v1139_v24 = vpop.permute.xlu2 %1138  ;;  %vm919_vm5 = vweird.f32 %v2804_v32 }
 0x51d   :  { %2427 = vmatmul.msk.f32.vlgmr.msrb.gmra.mxu1 %vm573_vm13, %v1139_v24  ;;  %vm920_vm7 = vmor %vm918_vm6, %vm919_vm5 }
 0x51e   :  { %v915_v46 = vsub.f32 1.0, %v914_v23 }
 0x520   :  { %v916_v26 = vmul.f32 %v2804_v32, %v915_v46 }
 0x522   :  { %v917_v28 = vadd.f32 %v2804_v32, %v916_v26 }
 0x524   :  { %v921_v51 = vsel %vm920_vm7, %v2804_v32, %v917_v28 }
 0x525   :  { %2428 = vmatmul.msk.f32.gmra.mxu1 %vm573_vm13, %v1141_v30  ;;  %v926_v31 = vsel %vm923_vm8, %v925_v29, %v921_v51 }
 0x526   :  { %v934_v33 = vmul.f32 %v3467_v10, %v926_v31 }
 0x528   :  { %2420 = vmatmul.msk.f32.gmra.mxu3 %vm742_vm15, %v934_v33 }
 0x52e   :  { %v3501_v36 = vpop.f32.mrf.mxu2 }
 0x530   :  { %2435 = vmatmul.msk.f32.vlgmr.msrb.gmra.mxu3 %vm573_vm13, %v1217_v19 }
 0x536   :  { %v3519_v48 = vpop.f32.mrf.mxu3 }
 0x538   :  { %2436 = vmatmul.msk.f32.gmra.mxu3 %vm573_vm13, %v1219_v34 }
 0x565   :  { %v3503_v6 = vpop.f32.mrf.mxu1 }
 0x56a   :  { %v3505_v9 = vpop.f32.mrf.mxu2 }
 0x56b   :  { %v2724_v10 = vpack.i.bf16 %v3505_v9, %v3501_v36 }
 0x56d   :  { %v3509_v37 = vpop.f32.mrf.mxu1 }
 0x56e   :  { %v2719_v17 = vpack.i.bf16 %v3509_v37, %v3503_v6 }
 0x572   :  { %v1135_v39 = vpop.f32.mrf.mxu2 }
 0x573   :  { %v1256_v50 = vmul.f32 0.17677669, %v1135_v39 }
 0x575   :  { %v1264_v15 = vsel %vm3324_vm0, -1e+08, %v1256_v50 }
 0x576   :  { %v1274_v19 = vsel %vm742_vm15, %v1264_v15, -inf }
 0x57a   :  { %v1210_v5 = vpop.f32.mrf.mxu2 }
 0x57b   :  { %v1259_v40 = vmul.f32 0.17677669, %v1210_v5 }
 0x57d   :  { %v1267_v14 = vsel %vm3312_vm14, -1e+08, %v1259_v40 }
 0x57e   :  { %v1283_v41 = vsel %vm742_vm15, %v1267_v14, -inf }
 0x57f   :  { %1284 = vmax.xlane.f32.xlu0 %v1283_v41 }
 0x582   :  { %v1213_v60 = vpop.f32.mrf.mxu2 }
 0x583   :  { %v1260_v1 = vmul.f32 0.17677669, %v1213_v60 }
 0x585   :  { %v1268_v2 = vsel %vm3324_vm0, -1e+08, %v1260_v1 }
 0x586   :  { %v1286_v12 = vsel %vm742_vm15, %v1268_v2, -inf }
 0x59a   :  { %v1171_v42 = vpop.f32.mrf.mxu1 }
 0x59b   :  { %v1257_v44 = vmul.f32 0.17677669, %v1171_v42 }
 0x59d   :  { %v1265_v45 = vsel %vm3312_vm14, -1e+08, %v1257_v44 }
 0x59e   :  { %v1277_v38 = vsel %vm742_vm15, %v1265_v45, -inf }
 0x59f   :  { %1278 = vmax.xlane.f32.xlu1 %v1277_v38 }
 0x5a2   :  { %v1174_v43 = vpop.f32.mrf.mxu1 }
 0x5a3   :  { %v1258_v61 = vmul.f32 0.17677669, %v1174_v43 }
 0x5a5   :  { %v1266_v49 = vsel %vm3324_vm0, -1e+08, %v1258_v61 }
 0x5a6   :  { %v1280_v54 = vsel %vm742_vm15, %v1266_v49, -inf }
 0x5a7   :  { %1281 = vmax.xlane.f32.xlu1 %v1280_v54 }
 0x5ab   :  { %v3524_v55 = vpop.f32.mrf.mxu3 }
 0x5ac   :  { %v2729_v58 = vpack.i.bf16 %v3524_v55, %v3519_v48 }
 0x5b3   :  { %v1249_v59 = vpop.f32.mrf.mxu3 }
 0x5b4   :  { %v1261_v52 = vmul.f32 0.17677669, %v1249_v59 }
 0x5b6   :  { %v1269_v22 = vsel %vm3312_vm14, -1e+08, %v1261_v52 }
 0x5b7   :  { %v1289_v0 = vsel %vm742_vm15, %v1269_v22, -inf }
 0x5b8   :  { %1290 = vmax.xlane.f32.xlu2 %v1289_v0 }
 0x5bb   :  { %v1252_v11 = vpop.f32.mrf.mxu3 }
 0x5bc   :  { %v1262_v53 = vmul.f32 0.17677669, %v1252_v11 }
 0x5be   :  { %v1270_v7 = vsel %vm3324_vm0, -1e+08, %v1262_v53 }
 0x5bf   :  { %v1292_v16 = vsel %vm742_vm15, %v1270_v7, -inf }
 0x5c0   :  { %1287 = vmax.xlane.f32.xlu2 %v1286_v12  ;;  %1293 = vmax.xlane.f32.xlu0 %v1292_v16 }
 0x5c8   :  { %1272 = vmax.xlane.f32.xlu2 %v1271_v63  ;;  %1275 = vmax.xlane.f32.xlu0 %v1274_v19 }
 0x5f2   :  { %v1285_v20 = vpop.xlane.xlu0 %1284 }
 0x5f3   :  { %v1299_v47 = vsub.f32 %v1267_v14, %v1285_v20 }
 0x5f5   :  { %v1311_v21 = vmul.f32 1.442695, %v1299_v47 }
 0x5f7   :  { %2805 = vpow2.f32 %v1311_v21 }
 0x5fd   :  { %v3546_v32 = vpop.eup %2805 }
 0x5fe   :  { %v1331_v4 = vsel %vm742_vm15, %v3546_v32, 0.0 }
 0x5ff   :  { %1332 = vadd.xlane.f32.xlu1 %v1331_v4 }
 0x612   :  { %v1279_v23 = vpop.xlane.xlu1 %1278 }
 0x613   :  { %v1297_v13 = vsub.f32 %v1265_v45, %v1279_v23 }
 0x615   :  { %v1307_v24 = vmul.f32 1.442695, %v1297_v13 }
 0x617   :  { %2807 = vpow2.f32 %v1307_v24 }
 0x61a   :  { %v1282_v46 = vpop.xlane.xlu1 %1281 }
 0x61b   :  { %v1298_v25 = vsub.f32 %v1266_v49, %v1282_v46 }
 0x61d   :  { %v3550_v26 = vpop.eup %2807  ;;  %v1309_v27 = vmul.f32 1.442695, %v1298_v25 }
 0x61e   :  { %v1325_v28 = vsel %vm742_vm15, %v3550_v26, 0.0 }
 0x61f   :  { %2809 = vpow2.f32 %v1309_v27  ;;  %1326 = vadd.xlane.f32.xlu0 %v1325_v28 }
 0x625   :  { %v3554_v29 = vpop.eup %2809 }
 0x626   :  { %v1328_v30 = vsel %vm742_vm15, %v3554_v29, 0.0 }
 0x627   :  { %1329 = vadd.xlane.f32.xlu0 %v1328_v30 }
 0x62b   :  { %v1291_v51 = vpop.xlane.xlu2 %1290 }
 0x62c   :  { %v1301_v31 = vsub.f32 %v1269_v22, %v1291_v51 }
 0x62e   :  { %v1315_v33 = vmul.f32 1.442695, %v1301_v31 }
 0x630   :  { %2811 = vpow2.f32 %v1315_v33 }
 0x633   :  { %v1288_v34 = vpop.xlane.xlu2 %1287  ;;  %v1294_v39 = vpop.xlane.xlu0 %1293 }
 0x634   :  { %v1300_v5 = vsub.f32 %v1268_v2, %v1288_v34  ;;  %v1302_v40 = vsub.f32 %v1270_v7, %v1294_v39 }
 0x636   :  { %v3558_v14 = vpop.eup %2811  ;;  %v1313_v41 = vmul.f32 1.442695, %v1300_v5  ;;  %v1317_v42 = vmul.f32 1.442695, %v1302_v40 }
 0x637   :  { %v1337_v44 = vsel %vm742_vm15, %v3558_v14, 0.0 }
 0x638   :  { %2813 = vpow2.f32 %v1313_v41  ;;  %1338 = vadd.xlane.f32.xlu2 %v1337_v44 }
 0x639   :  { %2815 = vpow2.f32 %v1317_v42 }
 0x63b   :  { %2715 = vrot.lane.b32.xlu0 %v3405_v62, %s3116_s30  ;;  %v1276_v49 = vpop.xlane.xlu0 %1275  ;;  %v1273_v22 = vpop.xlane.xlu2 %1272 }
 0x63c   :  { %v1296_v54 = vsub.f32 %v1264_v15, %v1276_v49 }
 0x63e   :  { %v3564_v45 = vpop.eup %2813  ;;  %v1305_v59 = vmul.f32 1.442695, %v1296_v54 }
 0x63f   :  { %v3566_v38 = vpop.eup %2815  ;;  %v1334_v43 = vsel %vm742_vm15, %v3564_v45, 0.0 }
 0x640   :  { %1335 = vadd.xlane.f32.xlu1 %v1334_v43  ;;  %v1340_v61 = vsel %vm742_vm15, %v3566_v38, 0.0  ;;  %2817 = vpow2.f32 %v1305_v59 }
 0x641   :  { %1341 = vadd.xlane.f32.xlu2 %v1340_v61 }
 0x646   :  { %v3576_v52 = vpop.eup %2817 }
 0x647   :  { %v1322_v60 = vsel %vm742_vm15, %v3576_v52, 0.0 }
 0x659   :  { %2710 = vrot.lane.b32.xlu2 %v3405_v62, %s3117_s4  ;;  %2705 = vrot.lane.b32.xlu1 %v3405_v62, %s3111_s21  ;;  %v1295_v62 = vsub.f32 %v3539_v56, %v1273_v22 }
 0x65b   :  { %v1303_v0 = vmul.f32 1.442695, %v1295_v62 }
 0x65d   :  { %2819 = vpow2.f32 %v1303_v0 }
 0x661   :  { %2720 = vrot.lane.b32.xlu2 %v2719_v17, %s3117_s4 }
 0x663   :  { %v3593_v6 = vpop.eup %2819 }
 0x664   :  { %v1319_v37 = vsel %vm742_vm15, %v3593_v6, 0.0 }
 0x665   :  { %1323 = vadd.xlane.f32.xlu0 %v1322_v60 }
 0x669   :  { %2725 = vrot.lane.b32.xlu2 %v2724_v10, %s3111_s21 }
 0x671   :  { %2730 = vrot.lane.b32.xlu2 %v2729_v58, %s3116_s30 }
 0x672   :  { %v3597_v50 = vpop.xlane.xlu1 %1332 }
 0x683   :  { %1320 = vadd.xlane.f32.xlu1 %v1319_v37 }
 0x692   :  { %v1327_v17 = vpop.xlane.xlu0 %1326 }
 0x693   :  { %2821 = vrcp.f32 %v1327_v17  ;;  %v1382_v58 = vand.u32 2147483648, %v1327_v17  ;;  %vm1376_vm0 = vweird.f32 %v1327_v17  ;;  %v1380_v3 = vand.u32 2147483647, %v1327_v17 }
 0x695   :  { %v1383_v18 = vor.u32 1.1754944e-38, %v1382_v58  ;;  %vm1381_vm10 = vcmp.eq.f32.partialorder %v1380_v3, 8.507059e+37 }
 0x699   :  { %v2822_v36 = vpop.eup %2821 }
 0x69a   :  { %v1330_v9 = vpop.xlane.xlu0 %1329  ;;  %v1372_v10 = vmul.f32 %v2822_v36, %v1327_v17  ;;  %vm1377_vm14 = vweird.f32 %v2822_v36 }
 0x69b   :  { %2823 = vrcp.f32 %v1330_v9  ;;  %vm1378_vm9 = vmor %vm1376_vm0, %vm1377_vm14  ;;  %v1396_v20 = vand.u32 2147483648, %v1330_v9  ;;  %vm1390_vm12 = vweird.f32 %v1330_v9  ;;  %v1394_v4 = vand.u32 2147483647, %v1330_v9 }
 0x69c   :  { %v1373_v1 = vsub.f32 1.0, %v1372_v10 }
 0x69d   :  { %v1397_v46 = vor.u32 1.1754944e-38, %v1396_v20  ;;  %vm1395_vm2 = vcmp.eq.f32.partialorder %v1394_v4, 8.507059e+37  ;;  %v2636_v4 = vld [vmem:[#allocation10 + $0x38] sm:$0xff] }
 0x69e   :  { %v1374_v53 = vmul.f32 %v2822_v36, %v1373_v1  ;;  %1699 = vmatpush.bf16.msrb.mxu0 %v2636_v4 }
 0x6a0   :  { %v1375_v48 = vadd.f32 %v2822_v36, %v1374_v53 }
 0x6a1   :  { %v2824_v11 = vpop.eup %2823 }
 0x6a2   :  { %v1386_v2 = vmul.f32 %v2824_v11, %v1330_v9  ;;  %v1379_v7 = vsel %vm1378_vm9, %v2822_v36, %v1375_v48  ;;  %vm1391_vm11 = vweird.f32 %v2824_v11  ;;  %v1408_v48 = vand.u32 2147483647, %v3597_v50 }
 0x6a3   :  { %v1384_v15 = vsel %vm1381_vm10, %v1383_v18, %v1379_v7  ;;  %vm1392_vm1 = vmor %vm1390_vm12, %vm1391_vm11  ;;  %vm1404_vm10 = vweird.f32 %v3597_v50 }
 0x6a4   :  { %v1387_v55 = vsub.f32 1.0, %v1386_v2  ;;  %v1457_v21 = vmul.f32 %v3550_v26, %v1384_v15  ;;  %vm1409_vm12 = vcmp.eq.f32.partialorder %v1408_v48, 8.507059e+37 }
 0x6a6   :  { %v1388_v12 = vmul.f32 %v2824_v11, %v1387_v55 }
 0x6a8   :  { %v1389_v19 = vadd.f32 %v2824_v11, %v1388_v12 }
 0x6aa   :  { %v1393_v24 = vsel %vm1392_vm1, %v2824_v11, %v1389_v19 }
 0x6ab   :  { %v1339_v16 = vpop.xlane.xlu2 %1338  ;;  %v1398_v51 = vsel %vm1395_vm2, %v1397_v46, %v1393_v24  ;;  %v2632_v46 = vld [vmem:[#allocation10 + $0x18] sm:$0xff] }
 0x6ac   :  { %2825 = vrcp.f32 %v1339_v16  ;;  %v1438_v26 = vand.u32 2147483648, %v1339_v16  ;;  %v1436_v33 = vand.u32 2147483647, %v1339_v16  ;;  %vm1432_vm4 = vweird.f32 %v1339_v16 }
 0x6ad   :  { %v2716_v56 = vpop.permute.xlu0 %2715  ;;  %2827 = vrcp.f32 %v3597_v50  ;;  %v1458_v5 = vmul.f32 %v3554_v29, %v1398_v51 }
 0x6ae   :  { %v2717_v63 = vunpack.i.l.bf16 %v2716_v56  ;;  %v2718_v47 = vunpack.i.h.bf16 %v2716_v56  ;;  %v1439_v42 = vor.u32 1.1754944e-38, %v1438_v26  ;;  %vm1437_vm6 = vcmp.eq.f32.partialorder %v1436_v33, 8.507059e+37 }
 0x6b0   :  { %1520 = vmatpush.msra.mxu1 %v2717_v63 }
 0x6b2   :  { %v2826_v23 = vpop.eup %2825  ;;  %1521 = vmatpush.msra.mxu1 %v2718_v47 }
 0x6b3   :  { %v1428_v13 = vmul.f32 %v2826_v23, %v1339_v16  ;;  %2439 = vmatmul.msk.f32.vlgmr.msra.gmra.mxu1 %vm742_vm15, %v1457_v21  ;;  %v3602_v28 = vpop.xlane.xlu1 %1335  ;;  %v2828_v30 = vpop.eup %2827  ;;  %vm1433_vm3 = vweird.f32 %v2826_v23 }
 0x6b4   :  { %v1342_v25 = vpop.xlane.xlu2 %1341  ;;  %v1400_v34 = vmul.f32 %v2828_v30, %v3597_v50  ;;  %vm1434_vm5 = vmor %vm1432_vm4, %vm1433_vm3  ;;  %vm1405_vm9 = vweird.f32 %v2828_v30  ;;  %v1424_v15 = vand.u32 2147483648, %v3602_v28  ;;  %vm1418_vm2 = vweird.f32 %v3602_v28 }
 0x6b5   :  { %v1429_v27 = vsub.f32 1.0, %v1428_v13  ;;  %2829 = vrcp.f32 %v1342_v25  ;;  %v1452_v22 = vand.u32 2147483648, %v1342_v25  ;;  %v1450_v37 = vand.u32 2147483647, %v1342_v25  ;;  %vm1406_vm11 = vmor %vm1404_vm10, %vm1405_vm9  ;;  %v2634_v13 = vld [vmem:[#allocation10 + $0x28] sm:$0xff] }
 0x6b6   :  { %2831 = vrcp.f32 %v3602_v28  ;;  %v1401_v61 = vsub.f32 1.0, %v1400_v34  ;;  %vm1446_vm8 = vweird.f32 %v1342_v25  ;;  %v1425_v20 = vor.u32 1.1754944e-38, %v1424_v15 }
 0x6b7   :  { %v1430_v31 = vmul.f32 %v2826_v23, %v1429_v27  ;;  %v1453_v10 = vor.u32 1.1754944e-38, %v1452_v22  ;;  %vm1451_vm0 = vcmp.eq.f32.partialorder %v1450_v37, 8.507059e+37 }
 0x6b8   :  { %v1402_v17 = vmul.f32 %v2828_v30, %v1401_v61 }
 0x6b9   :  { %v1431_v39 = vadd.f32 %v2826_v23, %v1430_v31  ;;  %v2629_v31 = vld [vmem:[#allocation10] sm:$0xff] }
 0x6ba   :  { %v1403_v11 = vadd.f32 %v2828_v30, %v1402_v17 }
 0x6bb   :  { %v2830_v40 = vpop.eup %2829  ;;  %v1435_v41 = vsel %vm1434_vm5, %v2826_v23, %v1431_v39  ;;  %2440 = vmatmul.msk.f32.gmra.mxu1 %vm742_vm15, %v1458_v5  ;;  %v2635_v23 = vld [vmem:[#allocation10 + $0x30] sm:$0xff] }
 0x6bc   :  { %v1442_v44 = vmul.f32 %v2830_v40, %v1342_v25  ;;  %v2711_v43 = vpop.permute.xlu2 %2710  ;;  %v1440_v49 = vsel %vm1437_vm6, %v1439_v42, %v1435_v41  ;;  %v2832_v59 = vpop.eup %2831  ;;  %vm1447_vm7 = vweird.f32 %v2830_v40  ;;  %v1407_v58 = vsel %vm1406_vm11, %v2828_v30, %v1403_v11  ;;  %1700 = vmatpush.bf16.msrb.mxu0 %v2635_v23  ;;  %v2631_v25 = vld [vmem:[#allocation10 + $0x10] sm:$0xff] }
 0x6bd   :  { %v2712_v54 = vunpack.i.l.bf16 %v2711_v43  ;;  %v2713_v62 = vunpack.i.h.bf16 %v2711_v43  ;;  %v1461_v29 = vmul.f32 %v3558_v14, %v1440_v49  ;;  %v1414_v36 = vmul.f32 %v2832_v59, %v3602_v28  ;;  %vm1448_vm14 = vmor %vm1446_vm8, %vm1447_vm7 }
 0x6be   :  { %v1443_v60 = vsub.f32 1.0, %v1442_v44  ;;  %v1410_v14 = vand.u32 2147483648, %v3597_v50  ;;  %vm1419_vm1 = vweird.f32 %v2832_v59  ;;  %vm1097_vm11 = vcmask 523264  }
 0x6bf   :  { %1590 = vmatpush.msra.mxu3 %v2712_v54  ;;  %v1415_v53 = vsub.f32 1.0, %v1414_v36  ;;  %vm1420_vm3 = vmor %vm1418_vm2, %vm1419_vm1 }
 0x6c0   :  { %v1444_v0 = vmul.f32 %v2830_v40, %v1443_v60  ;;  %v1411_v7 = vor.u32 1.1754944e-38, %v1410_v14  ;;  %1701 = vmatpush.bf16.msrb.mxu0 %v2634_v13 }
 0x6c1   :  { %1591 = vmatpush.msra.mxu3 %v2713_v62  ;;  %v1416_v3 = vmul.f32 %v2832_v59, %v1415_v53 }
 0x6c2   :  { %2443 = vmatmul.msk.f32.vlgmr.msra.gmra.mxu3 %vm742_vm15, %v1461_v29  ;;  %v1445_v9 = vadd.f32 %v2830_v40, %v1444_v0  ;;  %v1412_v16 = vsel %vm1409_vm12, %v1411_v7, %v1407_v58  ;;  %vm1100_vm12 = vcmask 785408  }
 0x6c3   :  { %v1417_v56 = vadd.f32 %v2832_v59, %v1416_v3  ;;  %v1459_v50 = vmul.f32 %v3546_v32, %v1412_v16  ;;  %v2633_v32 = vld [vmem:[#allocation10 + $0x20] sm:$0xff] }
 0x6c4   :  { %v1449_v1 = vsel %vm1448_vm14, %v2830_v40, %v1445_v9  ;;  %1702 = vmatpush.bf16.msrb.mxu0 %v2633_v32  ;;  %v2870_v32 = vld [vmem:[#allocation2 + $0x8] sm:$0xff] }
 0x6c5   :  { %v1454_v2 = vsel %vm1451_vm0, %v1453_v10, %v1449_v1  ;;  %v1421_v19 = vsel %vm1420_vm3, %v2832_v59, %v1417_v56 }
 0x6c6   :  { %v1462_v55 = vmul.f32 %v3566_v38, %v1454_v2  ;;  %v1422_v38 = vand.u32 2147483647, %v3602_v28  ;;  %v2630_v28 = vld [vmem:[#allocation10 + $0x8] sm:$0xff] }
 0x6c8   :  { %vm1423_vm4 = vcmp.eq.f32.partialorder %v1422_v38, 8.507059e+37  ;;  %1703 = vmatpush.bf16.msrb.mxu0 %v2632_v46 }
 0x6c9   :  { %v1426_v47 = vsel %vm1423_vm4, %v1425_v20, %v1421_v19  ;;  %v2751_v19 = vld [vmem:[#allocation11] ss:$0 sm:$0xff] }
 0x6ca   :  { %2444 = vmatmul.msk.f32.gmra.mxu3 %vm742_vm15, %v1462_v55  ;;  %v1460_v21 = vmul.f32 %v3564_v45, %v1426_v47  ;;  %v2721_v45 = vpop.permute.xlu2 %2720 }
 0x6cb   :  { %v2706_v12 = vpop.permute.xlu1 %2705  ;;  %v2723_v36 = vunpack.i.h.bf16 %v2721_v45  ;;  %v2722_v9 = vunpack.i.l.bf16 %v2721_v45 }
 0x6cc   :  { %v2707_v18 = vunpack.i.l.bf16 %v2706_v12  ;;  %v2708_v63 = vunpack.i.h.bf16 %v2706_v12  ;;  %1704 = vmatpush.bf16.msrb.mxu0 %v2631_v25 }
 0x6cd   :  { %v1095_v14 = vsel %vm573_vm13, %v3497_v35, %v2722_v9 }
 0x6ce   :  { %1555 = vmatpush.msra.mxu2 %v2707_v18 }
 0x6d0   :  { %1556 = vmatpush.msra.mxu2 %v2708_v63  ;;  %1705 = vmatpush.bf16.msrb.mxu0 %v2630_v28 }
 0x6d1   :  { %2441 = vmatmul.msk.f32.vlgmr.msra.gmra.mxu2 %vm742_vm15, %v1459_v50 }
 0x6d2   :  { %v2726_v44 = vpop.permute.xlu2 %2725 }
 0x6d3   :  { %v2728_v10 = vunpack.i.h.bf16 %v2726_v44  ;;  %v2727_v1 = vunpack.i.l.bf16 %v2726_v44 }
 0x6d4   :  { %1706 = vmatpush.bf16.msrb.mxu0 %v2629_v31 }
 0x6d5   :  { %v1098_v48 = vsel %vm1097_vm11, %v1095_v14, %v2727_v1 }
 0x6d8   :  { %v1324_v24 = vpop.xlane.xlu0 %1323 }
 0x6d9   :  { %2442 = vmatmul.msk.f32.gmra.mxu2 %vm742_vm15, %v1460_v21  ;;  %2833 = vrcp.f32 %v1324_v24  ;;  %v1368_v59 = vand.u32 2147483648, %v1324_v24  ;;  %vm1362_vm0 = vweird.f32 %v1324_v24  ;;  %v1366_v62 = vand.u32 2147483647, %v1324_v24  ;;  %v2869_v21 = vld [vmem:[#allocation2] sm:$0xff] }
 0x6da   :  { %v2731_v17 = vpop.permute.xlu2 %2730 }
 0x6db   :  { %v1369_v29 = vor.u32 1.1754944e-38, %v1368_v59  ;;  %vm1367_vm10 = vcmp.eq.f32.partialorder %v1366_v62, 8.507059e+37  ;;  %v2733_v53 = vunpack.i.h.bf16 %v2731_v17  ;;  %v2732_v2 = vunpack.i.l.bf16 %v2731_v17  ;;  %v2872_v17 = vld [vmem:[#allocation2 + $0x18] sm:$0xff] }
 0x6dd   :  { %v1101_v58 = vsel %vm1100_vm12, %v1098_v48, %v2732_v2 }
 0x6df   :  { %v2834_v30 = vpop.eup %2833 }
 0x6e0   :  { %v1358_v51 = vmul.f32 %v2834_v30, %v1324_v24  ;;  %vm1363_vm14 = vweird.f32 %v2834_v30 }
 0x6e1   :  { %vm1364_vm9 = vmor %vm1362_vm0, %vm1363_vm14 }
 0x6e2   :  { %v1359_v33 = vsub.f32 1.0, %v1358_v51 }
 0x6e4   :  { %v1360_v40 = vmul.f32 %v2834_v30, %v1359_v33 }
 0x6e6   :  { %v1361_v54 = vadd.f32 %v2834_v30, %v1360_v40 }
 0x6e8   :  { %v1365_v0 = vsel %vm1364_vm9, %v2834_v30, %v1361_v54 }
 0x6e9   :  { %v1370_v37 = vsel %vm1367_vm10, %v1369_v29, %v1365_v0 }
 0x6ea   :  { %v1456_v11 = vmul.f32 %v3576_v52, %v1370_v37 }
 0x6f6   :  { %v1321_v27 = vpop.xlane.xlu1 %1320 }
 0x6f7   :  { %2835 = vrcp.f32 %v1321_v27  ;;  %v1354_v5 = vand.u32 2147483648, %v1321_v27  ;;  %v1352_v42 = vand.u32 2147483647, %v1321_v27  ;;  %vm1348_vm6 = vweird.f32 %v1321_v27 }
 0x6f9   :  { %v1355_v61 = vor.u32 1.1754944e-38, %v1354_v5  ;;  %vm1353_vm8 = vcmp.eq.f32.partialorder %v1352_v42, 8.507059e+37 }
 0x6fd   :  { %v2836_v26 = vpop.eup %2835 }
 0x6fe   :  { %v1344_v34 = vmul.f32 %v2836_v26, %v1321_v27  ;;  %vm1349_vm5 = vweird.f32 %v2836_v26 }
 0x6ff   :  { %vm1350_vm7 = vmor %vm1348_vm6, %vm1349_vm5 }
 0x700   :  { %v1345_v39 = vsub.f32 1.0, %v1344_v34 }
 0x702   :  { %v1346_v41 = vmul.f32 %v2836_v26, %v1345_v39 }
 0x704   :  { %v1347_v43 = vadd.f32 %v2836_v26, %v1346_v41 }
 0x706   :  { %v1351_v49 = vsel %vm1350_vm7, %v2836_v26, %v1347_v43 }
 0x707   :  { %v1356_v60 = vsel %vm1353_vm8, %v1355_v61, %v1351_v49 }
 0x708   :  { %v1455_v22 = vmul.f32 %v3593_v6, %v1356_v60  ;;  %v1096_v6 = vsel %vm573_vm13, %v3499_v57, %v2723_v36  ;;  %v2871_v60 = vld [vmem:[#allocation2 + $0x10] sm:$0xff] }
 0x709   :  { %v1099_v55 = vsel %vm1097_vm11, %v1096_v6, %v2728_v10 }
 0x70a   :  { %2437 = vmatmul.msk.f32.vlgmr.msra.gmra.mxu0 %vm742_vm15, %v1455_v22  ;;  %v1102_v52 = vsel %vm1100_vm12, %v1099_v55, %v2733_v53 }
 0x70b   :  { %v1629_v3 = vpack.c.bf16 %v1102_v52, %v1101_v58 }
 0x712   :  { %2438 = vmatmul.msk.f32.gmra.mxu0 %vm742_vm15, %v1456_v11 }
 0x71a   :  { %1707 = vmatmul.bf16.vlgmr.msrb.gmra.mxu0 %v1629_v3 }
 0x730   :  { %v1523_v7 = vpop.f32.mrf.mxu1 }
 0x738   :  { %v1526_v12 = vpop.f32.mrf.mxu1 }
 0x739   :  { %v2734_v16 = vpack.i.bf16 %v1526_v12, %v1523_v7  ;;  %v2535_v12 = vld [vmem:[#allocation13 + $0x70] sm:$0xf] }
 0x73b   :  { %2735 = vrot.lane.b32.xlu2 %v2734_v16, %s3117_s4  ;;  %v2652_v16 = vld [vmem:[#allocation13 + $0x74] sm:$0xf0] }
 0x745   :  { %v1593_v18 = vpop.f32.mrf.mxu3 }
 0x74d   :  { %v1596_v57 = vpop.f32.mrf.mxu3 }
 0x74e   :  { %v2744_v56 = vpack.i.bf16 %v1596_v57, %v1593_v18  ;;  %v2651_v18 = vld [vmem:[#allocation13 + $0x74] sm:$0xf] }
 0x750   :  { %2745 = vrot.lane.b32.xlu1 %v2744_v56, %s3116_s30  ;;  %v2536_v56 = vor.u32 %v2652_v16, %v2535_v12 }
 0x752   :  { %1986 = vmatpush.bf16.msrb.mxu1 %v2536_v56 }
 0x754   :  { %v1558_v35 = vpop.f32.mrf.mxu2 }
 0x75c   :  { %v1561_v15 = vpop.f32.mrf.mxu2 }
 0x75d   :  { %v2739_v63 = vpack.i.bf16 %v1561_v15, %v1558_v35  ;;  %v2537_v35 = vld [vmem:[#allocation13 + $0x78] sm:$0xf0]  ;;  %v2527_v15 = vld [vmem:[#allocation13 + $0x60] sm:$0xf] }
 0x75f   :  { %2740 = vrot.lane.b32.xlu2 %v2739_v63, %s3111_s21  ;;  %v2650_v63 = vld [vmem:[#allocation13 + $0x64] sm:$0xf0]  ;;  %s2284_s21 = sshll.u32 %s3756_s13, 4  ;;  %s2285_s21 = int_to_ptr.hbm [resolvable:$true] %s2284_s21 }
 0x787   :  { %v1486_v50 = vpop.f32.mrf.mxu0 }
 0x78f   :  { %v1489_v38 = vpop.f32.mrf.mxu0 }
 0x795   :  { %v2736_v46 = vpop.permute.xlu2 %2735 }
 0x796   :  { %v2738_v27 = vunpack.i.h.bf16 %v2736_v46  ;;  %v2737_v28 = vunpack.i.l.bf16 %v2736_v46  ;;  %v2648_v46 = vld [vmem:[#allocation13 + $0x54] sm:$0xf0] }
 0x797   :  { %v1708_v20 = vpop.f32.mrf.mxu0 }
 0x798   :  { %v1709_v47 = vadd.f32 %v2751_v19, %v1708_v20  ;;  %v1624_v31 = vsel %vm573_vm13, %v1489_v38, %v2738_v27  ;;  %v1623_v26 = vsel %vm573_vm13, %v1486_v50, %v2737_v28  ;;  %v2540_v38 = vor.u32 %v2651_v18, %v2537_v35  ;;  %v2529_v20 = vld [vmem:[#allocation13 + $0x68] sm:$0xf0]  ;;  %v2521_v27 = vld [vmem:[#allocation13 + $0x58] sm:$0xf0]  ;;  %v2479_v18 = vld [vmem:[#allocation13] sm:$0xf] }
 0x799   :  { %v2637_v35 = vld [vmem:[#allocation13 + $0x4] sm:$0xf] }
 0x79a   :  { %v3638_v4 = vadd.f32 %v2869_v21, %v1709_v47  ;;  %v2528_v21 = vor.u32 %v2650_v63, %v2527_v15  ;;  %2005 = vmatpush.bf16.msrb.mxu2 %v2540_v38  ;;  %v2481_v15 = vld [vmem:[#allocation13 + $0x8] sm:$0xf0] }
 0x79c   :  { %1724 = vadd.xlane.f32.xlu0 %v3638_v4  ;;  %1987 = vmatpush.bf16.msrb.mxu1 %v2528_v21 }
 0x79f   :  { %v1710_v23 = vpop.f32.mrf.mxu0 }
 0x7a0   :  { %v1711_v13 = vadd.f32 %v2751_v19, %v1710_v23 }
 0x7a2   :  { %v3641_v24 = vadd.f32 %v2870_v32, %v1711_v13  ;;  %v2519_v32 = vld [vmem:[#allocation13 + $0x50] sm:$0xf] }
 0x7a4   :  { %1726 = vadd.xlane.f32.xlu2 %v3641_v24 }
 0x7b9   :  { %v2741_v25 = vpop.permute.xlu2 %2740 }
 0x7ba   :  { %v2743_v30 = vunpack.i.h.bf16 %v2741_v25  ;;  %v2742_v45 = vunpack.i.l.bf16 %v2741_v25  ;;  %v2647_v25 = vld [vmem:[#allocation13 + $0x54] sm:$0xf] }
 0x7bc   :  { %v1625_v39 = vsel %vm1097_vm11, %v1623_v26, %v2742_v45  ;;  %v1626_v5 = vsel %vm1097_vm11, %v1624_v31, %v2743_v30  ;;  %v2520_v45 = vor.u32 %v2648_v46, %v2519_v32  ;;  %v2511_v31 = vld [vmem:[#allocation13 + $0x40] sm:$0xf]  ;;  %v2646_v26 = vld [vmem:[#allocation13 + $0x44] sm:$0xf0] }
 0x7be   :  { %1988 = vmatpush.bf16.msrb.mxu1 %v2520_v45 }
 0x7c2   :  { %v2746_v51 = vpop.permute.xlu1 %2745 }
 0x7c3   :  { %v2748_v33 = vunpack.i.h.bf16 %v2746_v51  ;;  %v2747_v34 = vunpack.i.l.bf16 %v2746_v51  ;;  %v2524_v51 = vor.u32 %v2647_v25, %v2521_v27 }
 0x7c5   :  { %v1627_v40 = vsel %vm1100_vm12, %v1625_v39, %v2747_v34  ;;  %v1628_v41 = vsel %vm1100_vm12, %v1626_v5, %v2748_v33  ;;  %v2645_v34 = vld [vmem:[#allocation13 + $0x44] sm:$0xf]  ;;  %v2513_v39 = vld [vmem:[#allocation13 + $0x48] sm:$0xf0] }
 0x7c6   :  { %v1630_v42 = vpack.c.bf16 %v1628_v41, %v1627_v40 }
 0x7c8   :  { %1712 = vmatmul.bf16.gmra.mxu0 %v1630_v42  ;;  %v2512_v42 = vor.u32 %v2646_v26, %v2511_v31 }
 0x7ca   :  { %1989 = vmatpush.bf16.msrb.mxu1 %v2512_v42 }
 0x80f   :  { %v1725_v62 = vpop.xlane.xlu0 %1724 }
 0x810   :  { %v1732_v37 = vmul.f32 %v1725_v62, %v3223_v8 }
 0x812   :  { %v3664_v9 = vsub.f32 %v3638_v4, %v1732_v37  ;;  %v2495_v37 = vld [vmem:[#allocation13 + $0x20] sm:$0xf] }
 0x814   :  { %v1740_v10 = vmul.f32 %v3664_v9, %v3664_v9 }
 0x817   :  { %v1727_v44 = vpop.xlane.xlu2 %1726 }
 0x818   :  { %v1733_v43 = vmul.f32 %v1727_v44, %v3223_v8 }
 0x81a   :  { %v3652_v61 = vsub.f32 %v3641_v24, %v1733_v43  ;;  %v2516_v43 = vor.u32 %v2645_v34, %v2513_v39 }
 0x81c   :  { %v1741_v49 = vmul.f32 %v3652_v61, %v3652_v61 }
 0x81e   :  { %1746 = vadd.xlane.f32.xlu1 %v1741_v49  ;;  %v2503_v49 = vld [vmem:[#allocation13 + $0x30] sm:$0xf] }
 0x845   :  { %v1713_v54 = vpop.f32.mrf.mxu0 }
 0x846   :  { %v1714_v59 = vadd.f32 %v2751_v19, %v1713_v54  ;;  %v2644_v54 = vld [vmem:[#allocation13 + $0x34] sm:$0xf0] }
 0x848   :  { %v3656_v22 = vadd.f32 %v2871_v60, %v1714_v59  ;;  %v2643_v59 = vld [vmem:[#allocation13 + $0x34] sm:$0xf]  ;;  %v2505_v60 = vld [vmem:[#allocation13 + $0x38] sm:$0xf0] }
 0x84a   :  { %1728 = vadd.xlane.f32.xlu0 %v3656_v22 }
 0x84d   :  { %v1715_v0 = vpop.f32.mrf.mxu0 }
 0x84e   :  { %v1716_v29 = vadd.f32 %v2751_v19, %v1715_v0  ;;  %v2649_v19 = vld [vmem:[#allocation13 + $0x64] sm:$0xf]  ;;  %v2504_v0 = vor.u32 %v2644_v54, %v2503_v49 }
 0x84f   :  { %v2532_v13 = vor.u32 %v2649_v19, %v2529_v20  ;;  %v2484_v19 = vor.u32 %v2637_v35, %v2481_v15 }
 0x850   :  { %v3660_v36 = vadd.f32 %v2872_v17, %v1716_v29  ;;  %v2508_v29 = vor.u32 %v2643_v59, %v2505_v60  ;;  %v2642_v17 = vld [vmem:[#allocation13 + $0x24] sm:$0xf0]  ;;  %1990 = vmatpush.bf16.msrb.mxu1 %v2504_v0 }
 0x851   :  { %2006 = vmatpush.bf16.msrb.mxu2 %v2532_v13 }
 0x852   :  { %1730 = vadd.xlane.f32.xlu0 %v3660_v36 }
 0x855   :  { %2007 = vmatpush.bf16.msrb.mxu2 %v2524_v51 }
 0x859   :  { %2008 = vmatpush.bf16.msrb.mxu2 %v2516_v43 }
 0x85a   :  { %1744 = vadd.xlane.f32.xlu0 %v1740_v10  ;;  %v2641_v10 = vld [vmem:[#allocation13 + $0x24] sm:$0xf] }
 0x85d   :  { %2009 = vmatpush.bf16.msrb.mxu2 %v2508_v29 }
 0x891   :  { %v1747_v1 = vpop.xlane.xlu1 %1746 }
 0x892   :  { %v1753_v11 = vmul.f32 %v1747_v1, %v3223_v8  ;;  %v2497_v1 = vld [vmem:[#allocation13 + $0x28] sm:$0xf0] }
 0x894   :  { %v3669_v53 = vadd.f32 1e-05, %v1753_v11  ;;  %v2496_v11 = vor.u32 %v2642_v17, %v2495_v37 }
 0x896   :  { %2837 = vrsqrt.f32 %v3669_v53  ;;  %vm1779_vm13 = vcmp.eq.f32.partialorder %v3669_v53, inf  ;;  %v1782_v41 = vand.u32 2147483648, %v3669_v53  ;;  %vm1781_vm15 = vcmp.eq.f32.partialorder %v3669_v53, 0.0  ;;  %1991 = vmatpush.bf16.msrb.mxu1 %v2496_v11 }
 0x89c   :  { %v2838_v2 = vpop.eup %2837 }
 0x89d   :  { %v1773_v6 = vmul.f32 %v2838_v2, %v3669_v53 }
 0x89f   :  { %v1774_v14 = vmul.f32 %v2838_v2, %v1773_v6  ;;  %v2500_v6 = vor.u32 %v2641_v10, %v2497_v1 }
 0x8a1   :  { %v1775_v58 = vmul.f32 0.5, %v1774_v14  ;;  %v2487_v14 = vld [vmem:[#allocation13 + $0x10] sm:$0xf]  ;;  %2010 = vmatpush.bf16.msrb.mxu2 %v2500_v6 }
 0x8a3   :  { %v1776_v7 = vsub.f32 1.5, %v1775_v58  ;;  %v2489_v58 = vld [vmem:[#allocation13 + $0x18] sm:$0xf0] }
 0x8a5   :  { %v1777_v47 = vmul.f32 %v2838_v2, %v1776_v7 }
 0x8a7   :  { %v1778_v30 = vmul.f32 %v1777_v47, %v3669_v53 }
 0x8a9   :  { %v1780_v40 = vsel %vm1779_vm13, %v3669_v53, %v1778_v30  ;;  %v2640_v53 = vld [vmem:[#allocation13 + $0x14] sm:$0xf0] }
 0x8aa   :  { %v1783_v62 = vsel %vm1781_vm15, %v1782_v41, %v1780_v40  ;;  %v2488_v12 = vor.u32 %v2640_v53, %v2487_v14 }
 0x8ab   :  { %vm1828_vm4 = vweird.f32 %v1783_v62  ;;  %v1832_v30 = vand.u32 2147483647, %v1783_v62 }
 0x8ac   :  { %1992 = vmatpush.bf16.msrb.mxu1 %v2488_v12 }
 0x8ad   :  { %vm1833_vm6 = vcmp.eq.f32.partialorder %v1832_v30, 8.507059e+37 }
 0x8bd   :  { %v1729_v48 = vpop.xlane.xlu0 %1728 }
 0x8be   :  { %v1734_v55 = vmul.f32 %v1729_v48, %v3223_v8 }
 0x8c0   :  { %v3675_v52 = vsub.f32 %v3656_v22, %v1734_v55  ;;  %v2639_v55 = vld [vmem:[#allocation13 + $0x14] sm:$0xf] }
 0x8c1   :  { %v2492_v16 = vor.u32 %v2639_v55, %v2489_v58 }
 0x8c2   :  { %v1742_v3 = vmul.f32 %v3675_v52, %v3675_v52 }
 0x8c3   :  { %2011 = vmatpush.bf16.msrb.mxu2 %v2492_v16 }
 0x8c4   :  { %1748 = vadd.xlane.f32.xlu0 %v1742_v3 }
 0x8c5   :  { %v1731_v57 = vpop.xlane.xlu0 %1730 }
 0x8c6   :  { %v1735_v50 = vmul.f32 %v1731_v57, %v3223_v8  ;;  %v2638_v57 = vld [vmem:[#allocation13 + $0x4] sm:$0xf0] }
 0x8c7   :  { %v2480_v38 = vor.u32 %v2638_v57, %v2479_v18  ;;  %2012 = vmatpush.bf16.msrb.mxu2 %v2484_v19 }
 0x8c8   :  { %v3681_v23 = vsub.f32 %v3660_v36, %v1735_v50 }
 0x8c9   :  { %1993 = vmatpush.bf16.msrb.mxu1 %v2480_v38 }
 0x8ca   :  { %v1743_v28 = vmul.f32 %v3681_v23, %v3681_v23 }
 0x8cc   :  { %1750 = vadd.xlane.f32.xlu0 %v1743_v28  ;;  %v1834_v28 = vand.u32 2147483648, %v1783_v62 }
 0x8cd   :  { %v1745_v33 = vpop.xlane.xlu0 %1744 }
 0x8ce   :  { %v1752_v5 = vmul.f32 %v1745_v33, %v3223_v8  ;;  %v1835_v26 = vor.u32 1.1754944e-38, %v1834_v28 }
 0x8d0   :  { %v1756_v44 = vadd.f32 1e-05, %v1752_v5 }
 0x8d2   :  { %2839 = vrsqrt.f32 %v1756_v44  ;;  %vm1767_vm1 = vcmp.eq.f32.partialorder %v1756_v44, inf  ;;  %v1770_v13 = vand.u32 2147483648, %v1756_v44  ;;  %vm1769_vm2 = vcmp.eq.f32.partialorder %v1756_v44, 0.0 }
 0x8d3   :  { %2841 = vrcp.f32 %v1783_v62 }
 0x8d8   :  { %v2840_v2 = vpop.eup %2839 }
 0x8d9   :  { %v1761_v48 = vmul.f32 %v2840_v2, %v1756_v44  ;;  %v2842_v3 = vpop.eup %2841 }
 0x8da   :  { %v1824_v63 = vmul.f32 %v2842_v3, %v1783_v62  ;;  %vm1829_vm3 = vweird.f32 %v2842_v3  ;;  %v3702_v62 = vld [vmem:[%s3751_s8] ss:$0 sm:$0xff] }
 0x8db   :  { %v1762_v7 = vmul.f32 %v2840_v2, %v1761_v48  ;;  %vm1830_vm5 = vmor %vm1828_vm4, %vm1829_vm3 }
 0x8dc   :  { %v1825_v47 = vsub.f32 1.0, %v1824_v63 }
 0x8dd   :  { %v1763_v56 = vmul.f32 0.5, %v1762_v7 }
 0x8de   :  { %v1826_v25 = vmul.f32 %v2842_v3, %v1825_v47 }
 0x8df   :  { %v1764_v50 = vsub.f32 1.5, %v1763_v56 }
 0x8e0   :  { %v1827_v27 = vadd.f32 %v2842_v3, %v1826_v25 }
 0x8e1   :  { %v1765_v20 = vmul.f32 %v2840_v2, %v1764_v50 }
 0x8e2   :  { %v1831_v31 = vsel %vm1830_vm5, %v2842_v3, %v1827_v27 }
 0x8e3   :  { %v1766_v21 = vmul.f32 %v1765_v20, %v1756_v44  ;;  %v1836_v39 = vsel %vm1833_vm6, %v1835_v26, %v1831_v31 }
 0x8e4   :  { %v1837_v42 = vmul.f32 %v1836_v39, %v3652_v61  ;;  %v2660_v39 = vld [vmem:[#allocation14 + $0x38] sm:$0xff] }
 0x8e5   :  { %v1768_v32 = vsel %vm1767_vm1, %v1756_v44, %v1766_v21  ;;  %v3695_v44 = vld [vmem:[%s3750_s7] ss:$0 sm:$0xff]  ;;  %2232 = vmatpush.bf16.msrb.mxu3 %v2660_v39 }
 0x8e6   :  { %v1771_v46 = vsel %vm1769_vm2, %v1770_v13, %v1768_v32  ;;  %v1872_v60 = vmul.f32 %v3695_v44, %v1837_v42 }
 0x8e7   :  { %2843 = vrcp.f32 %v1771_v46  ;;  %v1819_v34 = vand.u32 2147483648, %v1771_v46  ;;  %v1817_v40 = vand.u32 2147483647, %v1771_v46  ;;  %vm1813_vm8 = vweird.f32 %v1771_v46 }
 0x8e8   :  { %v1879_v29 = vadd.f32 %v3702_v62, %v1872_v60  ;;  %v2668_v60 = vld [vmem:[#allocation14 + $0x78] sm:$0xff] }
 0x8e9   :  { %v1820_v43 = vor.u32 1.1754944e-38, %v1819_v34  ;;  %vm1818_vm0 = vcmp.eq.f32.partialorder %v1817_v40, 8.507059e+37  ;;  %2251 = vmatpush.bf16.msra.mxu0 %v2668_v60 }
 0x8ed   :  { %v2844_v45 = vpop.eup %2843 }
 0x8ee   :  { %v1809_v51 = vmul.f32 %v2844_v45, %v1771_v46  ;;  %vm1814_vm7 = vweird.f32 %v2844_v45 }
 0x8ef   :  { %vm1815_vm14 = vmor %vm1813_vm8, %vm1814_vm7 }
 0x8f0   :  { %v1810_v33 = vsub.f32 1.0, %v1809_v51 }
 0x8f2   :  { %v1811_v5 = vmul.f32 %v2844_v45, %v1810_v33 }
 0x8f4   :  { %v1812_v41 = vadd.f32 %v2844_v45, %v1811_v5 }
 0x8f6   :  { %v1816_v49 = vsel %vm1815_vm14, %v2844_v45, %v1812_v41 }
 0x8f7   :  { %v1821_v54 = vsel %vm1818_vm0, %v1820_v43, %v1816_v49  ;;  %v2659_v43 = vld [vmem:[#allocation14 + $0x30] sm:$0xff] }
 0x8f8   :  { %v1822_v59 = vmul.f32 %v1821_v54, %v3664_v9  ;;  %2233 = vmatpush.bf16.msrb.mxu3 %v2659_v43 }
 0x8fa   :  { %v1871_v61 = vmul.f32 %v3695_v44, %v1822_v59 }
 0x8fc   :  { %v1878_v0 = vadd.f32 %v3702_v62, %v1871_v61 }
 0x8fe   :  { %v1882_v37 = vpack.c.bf16 %v1879_v29, %v1878_v0  ;;  %v2658_v0 = vld [vmem:[#allocation14 + $0x28] sm:$0xff] }
 0x8ff   :  { %2234 = vmatpush.bf16.msrb.mxu3 %v2658_v0 }
 0x900   :  { %1994 = vmatmul.bf16.vlgmr.msrb.gmra.mxu1 %v1882_v37  ;;  %2013 = vmatmul.bf16.vlgmr.msrb.gmra.mxu2 %v1882_v37  ;;  %v2667_v37 = vld [vmem:[#allocation14 + $0x70] sm:$0xff] }
 0x901   :  { %2252 = vmatpush.bf16.msra.mxu0 %v2667_v37 }
 0x937   :  { %v1749_v17 = vpop.xlane.xlu0 %1748 }
 0x938   :  { %v1754_v10 = vmul.f32 %v1749_v17, %v3223_v8 }
 0x93a   :  { %v1758_v9 = vadd.f32 1e-05, %v1754_v10  ;;  %v2657_v10 = vld [vmem:[#allocation14 + $0x20] sm:$0xff] }
 0x93b   :  { %2235 = vmatpush.bf16.msrb.mxu3 %v2657_v10 }
 0x93c   :  { %2845 = vrsqrt.f32 %v1758_v9  ;;  %vm1791_vm9 = vcmp.eq.f32.partialorder %v1758_v9, inf  ;;  %v1794_v18 = vand.u32 2147483648, %v1758_v9  ;;  %vm1793_vm10 = vcmp.eq.f32.partialorder %v1758_v9, 0.0 }
 0x93f   :  { %v1751_v1 = vpop.xlane.xlu0 %1750 }
 0x940   :  { %v1755_v11 = vmul.f32 %v1751_v1, %v3223_v8  ;;  %v2665_v1 = vld [vmem:[#allocation14 + $0x60] sm:$0xff] }
 0x942   :  { %v2846_v2 = vpop.eup %2845  ;;  %v1759_v6 = vadd.f32 1e-05, %v1755_v11  ;;  %v2655_v11 = vld [vmem:[#allocation14 + $0x10] sm:$0xff] }
 0x943   :  { %v1785_v14 = vmul.f32 %v2846_v2, %v1758_v9 }
 0x944   :  { %2847 = vrsqrt.f32 %v1759_v6  ;;  %vm1803_vm11 = vcmp.eq.f32.partialorder %v1759_v6, inf  ;;  %v1806_v50 = vand.u32 2147483648, %v1759_v6  ;;  %vm1805_vm12 = vcmp.eq.f32.partialorder %v1759_v6, 0.0 }
 0x945   :  { %v1786_v53 = vmul.f32 %v2846_v2, %v1785_v14  ;;  %v2663_v14 = vld [vmem:[#allocation14 + $0x50] sm:$0xff] }
 0x947   :  { %v1787_v48 = vmul.f32 0.5, %v1786_v53 }
 0x949   :  { %v1788_v55 = vsub.f32 1.5, %v1787_v48 }
 0x94a   :  { %v2848_v58 = vpop.eup %2847 }
 0x94b   :  { %v1797_v3 = vmul.f32 %v2848_v58, %v1759_v6  ;;  %v1789_v7 = vmul.f32 %v2846_v2, %v1788_v55  ;;  %v2653_v55 = vld [vmem:[#allocation14] sm:$0xff] }
 0x94d   :  { %v1798_v12 = vmul.f32 %v2848_v58, %v1797_v3  ;;  %v1790_v16 = vmul.f32 %v1789_v7, %v1758_v9  ;;  %v2662_v7 = vld [vmem:[#allocation14 + $0x48] sm:$0xff] }
 0x94f   :  { %v1799_v57 = vmul.f32 0.5, %v1798_v12  ;;  %v1792_v56 = vsel %vm1791_vm9, %v1758_v9, %v1790_v16  ;;  %v2656_v9 = vld [vmem:[#allocation14 + $0x18] sm:$0xff] }
 0x950   :  { %v1795_v35 = vsel %vm1793_vm10, %v1794_v18, %v1792_v56  ;;  %2236 = vmatpush.bf16.msrb.mxu3 %v2656_v9  ;;  %v2661_v56 = vld [vmem:[#allocation14 + $0x40] sm:$0xff] }
 0x951   :  { %v1800_v15 = vsub.f32 1.5, %v1799_v57  ;;  %2849 = vrcp.f32 %v1795_v35  ;;  %v1849_v32 = vand.u32 2147483648, %v1795_v35  ;;  %vm1843_vm15 = vweird.f32 %v1795_v35 }
 0x952   :  { %v1847_v25 = vand.u32 2147483647, %v1795_v35 }
 0x953   :  { %v1801_v8 = vmul.f32 %v2848_v58, %v1800_v15  ;;  %v1850_v45 = vor.u32 1.1754944e-38, %v1849_v32 }
 0x954   :  { %vm1848_vm2 = vcmp.eq.f32.partialorder %v1847_v25, 8.507059e+37  ;;  %2237 = vmatpush.bf16.msrb.mxu3 %v2655_v11 }
 0x955   :  { %v1802_v63 = vmul.f32 %v1801_v8, %v1759_v6 }
 0x957   :  { %v2850_v38 = vpop.eup %2849  ;;  %v1804_v19 = vsel %vm1803_vm11, %v1759_v6, %v1802_v63  ;;  %v2654_v6 = vld [vmem:[#allocation14 + $0x8] sm:$0xff] }
 0x958   :  { %v1807_v20 = vsel %vm1805_vm12, %v1806_v50, %v1804_v19  ;;  %v1839_v47 = vmul.f32 %v2850_v38, %v1795_v35  ;;  %vm1844_vm13 = vweird.f32 %v2850_v38  ;;  %2238 = vmatpush.bf16.msrb.mxu3 %v2654_v6 }
 0x959   :  { %2851 = vrcp.f32 %v1807_v20  ;;  %vm1845_vm1 = vmor %vm1843_vm15, %vm1844_vm13  ;;  %v1864_v26 = vand.u32 2147483648, %v1807_v20  ;;  %v1862_v34 = vand.u32 2147483647, %v1807_v20  ;;  %vm1858_vm4 = vweird.f32 %v1807_v20 }
 0x95a   :  { %v1840_v21 = vsub.f32 1.0, %v1839_v47 }
 0x95b   :  { %v1865_v41 = vor.u32 1.1754944e-38, %v1864_v26  ;;  %vm1863_vm6 = vcmp.eq.f32.partialorder %v1862_v34, 8.507059e+37 }
 0x95c   :  { %v1841_v13 = vmul.f32 %v2850_v38, %v1840_v21  ;;  %2239 = vmatpush.bf16.msrb.mxu3 %v2653_v55 }
 0x95e   :  { %v1842_v46 = vadd.f32 %v2850_v38, %v1841_v13 }
 0x95f   :  { %v2852_v27 = vpop.eup %2851 }
 0x960   :  { %v1846_v28 = vsel %vm1845_vm1, %v2850_v38, %v1842_v46  ;;  %v1854_v30 = vmul.f32 %v2852_v27, %v1807_v20  ;;  %vm1859_vm3 = vweird.f32 %v2852_v27 }
 0x961   :  { %v1851_v31 = vsel %vm1848_vm2, %v1850_v45, %v1846_v28  ;;  %vm1860_vm5 = vmor %vm1858_vm4, %vm1859_vm3 }
 0x962   :  { %v1855_v51 = vsub.f32 1.0, %v1854_v30  ;;  %v1852_v5 = vmul.f32 %v1851_v31, %v3675_v52 }
 0x964   :  { %v1856_v33 = vmul.f32 %v2852_v27, %v1855_v51  ;;  %v1873_v59 = vmul.f32 %v3695_v44, %v1852_v5 }
 0x966   :  { %v1857_v40 = vadd.f32 %v2852_v27, %v1856_v33  ;;  %v1880_v52 = vadd.f32 %v3702_v62, %v1873_v59 }
 0x968   :  { %v1861_v42 = vsel %vm1860_vm5, %v2852_v27, %v1857_v40 }
 0x969   :  { %v1866_v49 = vsel %vm1863_vm6, %v1865_v41, %v1861_v42 }
 0x96a   :  { %v1867_v54 = vmul.f32 %v1866_v49, %v3681_v23  ;;  %v2666_v23 = vld [vmem:[#allocation14 + $0x68] sm:$0xff] }
 0x96b   :  { %2253 = vmatpush.bf16.msra.mxu0 %v2666_v23 }
 0x96c   :  { %v1874_v61 = vmul.f32 %v3695_v44, %v1867_v54  ;;  %v1900_v44 = vld [vmem:[%s3753_s10] sm:$0x3] }
 0x96d   :  { %v3718_v2 = vperm.slane %v1900_v44, 0  ;;  %v3721_v3 = vperm.slane %v1900_v44, 1 }
 0x96e   :  { %v1881_v29 = vadd.f32 %v3702_v62, %v1874_v61  ;;  %v2664_v62 = vld [vmem:[#allocation14 + $0x58] sm:$0xff] }
 0x96f   :  { %2254 = vmatpush.bf16.msra.mxu0 %v2665_v1 }
 0x970   :  { %v1883_v17 = vpack.c.bf16 %v1881_v29, %v1880_v52 }
 0x972   :  { %1999 = vmatmul.bf16.gmra.mxu1 %v1883_v17  ;;  %2018 = vmatmul.bf16.gmra.mxu2 %v1883_v17 }
 0x973   :  { %2255 = vmatpush.bf16.msra.mxu0 %v2664_v62 }
 0x977   :  { %2256 = vmatpush.bf16.msra.mxu0 %v2663_v14 }
 0x97b   :  { %2257 = vmatpush.bf16.msra.mxu0 %v2662_v7 }
 0x97d   :  { %v1995_v53 = vpop.f32.mrf.mxu1 }
 0x97e   :  { %v1996_v48 = vadd.f32 %v1995_v53, %v3718_v2 }
 0x97f   :  { %2258 = vmatpush.bf16.msra.mxu0 %v2661_v56 }
 0x980   :  { %v2032_v58 = vmul.f32 0.044715, %v1996_v48  ;;  %v2024_v5 = vmul.f32 0.5, %v1996_v48 }
 0x982   :  { %v2040_v12 = vmul.f32 %v2032_v58, %v1996_v48 }
 0x983   :  { %v2014_v16 = vpop.f32.mrf.mxu2 }
 0x984   :  { %v2048_v18 = vmul.f32 %v2040_v12, %v1996_v48  ;;  %v2015_v57 = vadd.f32 %v2014_v16, %v3721_v3 }
 0x985   :  { %v1997_v35 = vpop.f32.mrf.mxu1 }
 0x986   :  { %v2056_v15 = vadd.f32 %v2048_v18, %v1996_v48  ;;  %v2033_v8 = vmul.f32 0.044715, %v2015_v57  ;;  %v1998_v63 = vadd.f32 %v1997_v35, %v3718_v2  ;;  %v2025_v61 = vmul.f32 0.5, %v2015_v57 }
 0x988   :  { %v2041_v50 = vmul.f32 %v2033_v8, %v2015_v57  ;;  %v2034_v38 = vmul.f32 0.044715, %v1998_v63  ;;  %v2064_v19 = vmul.f32 0.7978846, %v2056_v15  ;;  %v2026_v40 = vmul.f32 0.5, %v1998_v63 }
 0x98a   :  { %v2049_v20 = vmul.f32 %v2041_v50, %v2015_v57  ;;  %v2042_v47 = vmul.f32 %v2034_v38, %v1998_v63  ;;  %2853 = vtanh.f32 %v2064_v19 }
 0x98b   :  { %v2016_v21 = vpop.f32.mrf.mxu2 }
 0x98c   :  { %v2057_v13 = vadd.f32 %v2049_v20, %v2015_v57  ;;  %v2050_v32 = vmul.f32 %v2042_v47, %v1998_v63  ;;  %v2017_v46 = vadd.f32 %v2016_v21, %v3721_v3 }
 0x98e   :  { %v2058_v25 = vadd.f32 %v2050_v32, %v1998_v63  ;;  %v2035_v27 = vmul.f32 0.044715, %v2017_v46  ;;  %v2065_v28 = vmul.f32 0.7978846, %v2057_v13  ;;  %v2027_v0 = vmul.f32 0.5, %v2017_v46 }
 0x990   :  { %v2066_v30 = vmul.f32 0.7978846, %v2058_v25  ;;  %v2043_v45 = vmul.f32 %v2035_v27, %v2017_v46  ;;  %v2854_v31 = vpop.eup %2853 }
 0x991   :  { %v2080_v34 = vadd.f32 1.0, %v2854_v31 }
 0x992   :  { %v2051_v51 = vmul.f32 %v2043_v45, %v2017_v46  ;;  %2855 = vtanh.f32 %v2066_v30 }
 0x993   :  { %2857 = vtanh.f32 %v2065_v28  ;;  %v2088_v43 = vmul.f32 %v2080_v34, %v2024_v5 }
 0x994   :  { %v2059_v26 = vadd.f32 %v2051_v51, %v2017_v46 }
 0x996   :  { %v2067_v33 = vmul.f32 0.7978846, %v2059_v26 }
 0x998   :  { %v2856_v39 = vpop.eup %2855  ;;  %2859 = vtanh.f32 %v2067_v33 }
 0x999   :  { %v2082_v41 = vadd.f32 1.0, %v2856_v39  ;;  %v2858_v42 = vpop.eup %2857 }
 0x99a   :  { %v2081_v59 = vadd.f32 1.0, %v2858_v42 }
 0x99b   :  { %v2090_v49 = vmul.f32 %v2082_v41, %v2026_v40  ;;  %v2754_v40 = vld [vmem:[%s3755_s12] ss:$0 sm:$0xff]  ;;  %s3118_s12 = smov [#allocation16]  }
 0x99c   :  { %v2089_v29 = vmul.f32 %v2081_v59, %v2025_v61  ;;  %s2282_s18 = sshll.u32 %s3118_s12, 4  ;;  %s2283_s18 = int_to_ptr.vmem [resolvable:$true] %s2282_s18 }
 0x99d   :  { %v2096_v54 = vpack.c.bf16 %v2090_v49, %v2088_v43 }
 0x99e   :  { %v2860_v60 = vpop.eup %2859 }
 0x99f   :  { %2240 = vmatmul.bf16.vlgmr.msrb.gmra.mxu3 %v2096_v54  ;;  %v2083_v52 = vadd.f32 1.0, %v2860_v60 }
 0x9a1   :  { %v2091_v37 = vmul.f32 %v2083_v52, %v2027_v0 }
 0x9a3   :  { %v2097_v17 = vpack.c.bf16 %v2091_v37, %v2089_v29 }
 0x9a5   :  { %2259 = vmatmul.bf16.vlgmr.msra.gmra.mxu0 %v2097_v17 }
 0x9ef   :  { %v2000_v10 = vpop.f32.mrf.mxu1 }
 0x9f0   :  { %v2001_v23 = vadd.f32 %v2000_v10, %v3718_v2 }
 0x9f2   :  { %v2036_v9 = vmul.f32 0.044715, %v2001_v23  ;;  %v2028_v32 = vmul.f32 0.5, %v2001_v23 }
 0x9f4   :  { %v2044_v1 = vmul.f32 %v2036_v9, %v2001_v23 }
 0x9f5   :  { %v2019_v44 = vpop.f32.mrf.mxu2 }
 0x9f6   :  { %v2020_v11 = vadd.f32 %v2019_v44, %v3721_v3  ;;  %v2052_v62 = vmul.f32 %v2044_v1, %v2001_v23 }
 0x9f7   :  { %v2002_v6 = vpop.f32.mrf.mxu1 }
 0x9f8   :  { %v2037_v14 = vmul.f32 0.044715, %v2020_v11  ;;  %v2003_v53 = vadd.f32 %v2002_v6, %v3718_v2  ;;  %v2060_v48 = vadd.f32 %v2052_v62, %v2001_v23  ;;  %v2029_v31 = vmul.f32 0.5, %v2020_v11 }
 0x9fa   :  { %v2038_v55 = vmul.f32 0.044715, %v2003_v53  ;;  %v2045_v58 = vmul.f32 %v2037_v14, %v2020_v11  ;;  %v2068_v12 = vmul.f32 0.7978846, %v2060_v48  ;;  %v2030_v46 = vmul.f32 0.5, %v2003_v53 }
 0x9fc   :  { %v2046_v7 = vmul.f32 %v2038_v55, %v2003_v53  ;;  %v2053_v16 = vmul.f32 %v2045_v58, %v2020_v11  ;;  %2861 = vtanh.f32 %v2068_v12 }
 0x9fd   :  { %v2021_v18 = vpop.f32.mrf.mxu2 }
 0x9fe   :  { %v2022_v57 = vadd.f32 %v2021_v18, %v3721_v3  ;;  %v2054_v56 = vmul.f32 %v2046_v7, %v2003_v53  ;;  %v2061_v35 = vadd.f32 %v2053_v16, %v2020_v11 }
 0xa00   :  { %v2039_v15 = vmul.f32 0.044715, %v2022_v57  ;;  %v2062_v8 = vadd.f32 %v2054_v56, %v2003_v53  ;;  %v2069_v38 = vmul.f32 0.7978846, %v2061_v35  ;;  %v2031_v26 = vmul.f32 0.5, %v2022_v57 }
 0xa02   :  { %v2070_v63 = vmul.f32 0.7978846, %v2062_v8  ;;  %v2047_v50 = vmul.f32 %v2039_v15, %v2022_v57  ;;  %v2862_v2 = vpop.eup %2861 }
 0xa03   :  { %v2084_v21 = vadd.f32 1.0, %v2862_v2 }
 0xa04   :  { %2863 = vtanh.f32 %v2070_v63  ;;  %v2055_v19 = vmul.f32 %v2047_v50, %v2022_v57 }
 0xa05   :  { %2865 = vtanh.f32 %v2069_v38  ;;  %v2092_v27 = vmul.f32 %v2084_v21, %v2028_v32 }
 0xa06   :  { %v2063_v20 = vadd.f32 %v2055_v19, %v2022_v57 }
 0xa08   :  { %v2071_v47 = vmul.f32 0.7978846, %v2063_v20 }
 0xa0a   :  { %v2864_v13 = vpop.eup %2863  ;;  %2867 = vtanh.f32 %v2071_v47 }
 0xa0b   :  { %v2086_v3 = vadd.f32 1.0, %v2864_v13  ;;  %v2866_v25 = vpop.eup %2865 }
 0xa0c   :  { %v2085_v45 = vadd.f32 1.0, %v2866_v25 }
 0xa0d   :  { %v2094_v28 = vmul.f32 %v2086_v3, %v2030_v46 }
 0xa0e   :  { %v2093_v34 = vmul.f32 %v2085_v45, %v2029_v31 }
 0xa0f   :  { %v2098_v30 = vpack.c.bf16 %v2094_v28, %v2092_v27 }
 0xa10   :  { %v2868_v51 = vpop.eup %2867 }
 0xa11   :  { %2245 = vmatmul.bf16.gmra.mxu3 %v2098_v30  ;;  %v2087_v33 = vadd.f32 1.0, %v2868_v51 }
 0xa13   :  { %v2095_v39 = vmul.f32 %v2087_v33, %v2031_v26 }
 0xa15   :  { %v2099_v5 = vpack.c.bf16 %v2095_v39, %v2093_v34 }
 0xa17   :  { %2264 = vmatmul.bf16.gmra.mxu0 %v2099_v5 }
 0xa22   :  { %v2241_v41 = vpop.f32.mrf.mxu3  ;;  %v2260_v42 = vpop.f32.mrf.mxu0 }
 0xa23   :  { %v2242_v43 = vadd.f32 %v2754_v40, %v2241_v41 }
 0xa25   :  { %v2261_v49 = vadd.f32 %v2260_v42, %v2242_v43 }
 0xa27   :  { %v2270_v54 = vadd.f32 %v2261_v49, %v3638_v4 }
 0xa29   :  { %2274 = vst [vmem:[#allocation16] sm:$0xff] %v2270_v54 }
 0xa2a   :  { %v2243_v59 = vpop.f32.mrf.mxu3  ;;  %v2262_v61 = vpop.f32.mrf.mxu0 }
 0xa2b   :  { %v2244_v60 = vadd.f32 %v2754_v40, %v2243_v59 }
 0xa2d   :  { %v2263_v0 = vadd.f32 %v2262_v61, %v2244_v60 }
 0xa2f   :  { %v2271_v52 = vadd.f32 %v2263_v0, %v3641_v24 }
 0xa31   :  { %2275 = vst [vmem:[#allocation16 + $0x8] sm:$0xff] %v2271_v52 }
 0xa94   :  { %v2246_v29 = vpop.f32.mrf.mxu3  ;;  %v2265_v37 = vpop.f32.mrf.mxu0 }
 0xa95   :  { %v2247_v17 = vadd.f32 %v2754_v40, %v2246_v29 }
 0xa97   :  { %v2266_v10 = vadd.f32 %v2265_v37, %v2247_v17 }
 0xa99   :  { %v2272_v23 = vadd.f32 %v2266_v10, %v3656_v22 }
 0xa9b   :  { %2276 = vst [vmem:[#allocation16 + $0x10] sm:$0xff] %v2272_v23 }
 0xa9c   :  { %v2248_v9 = vpop.f32.mrf.mxu3  ;;  %v2267_v44 = vpop.f32.mrf.mxu0 }
 0xa9d   :  { %v2249_v1 = vadd.f32 %v2754_v40, %v2248_v9 }
 0xa9f   :  { %v2268_v4 = vadd.f32 %v2267_v44, %v2249_v1 }
 0xaa1   :  { %v2273_v24 = vadd.f32 %v2268_v4, %v3660_v36 }
 0xaa3   :  { %2277 = vst [vmem:[#allocation16 + $0x18] sm:$0xff] %v2273_v24 }
 0xaa4   :  { %2290 = dma.vmem_to_hbm [thread:$0]  %s2283_s18, 512, %s2285_s21, [#allocation4], %s3107_s28, %s3107_s28, %s3108_s29  }
 0xaa5   :  { %3099 = dma.done.wait [#allocation4], 512  }
 0xaa6   :  { %3100 = vsyncadd [#allocation4], 4294966784 }
 0xaa7   :  { %2295 = vsyncpa [#allocation3], 1 }
 0xaa8   :  { %2296 = vsyncpa [#allocation6], 1 }
 0xaa9   :  { %2297 = vsyncpa [#allocation9], 1 }
 0xaaa   :  { %2298 = vsyncpa [#allocation12], 1 }
 0xaab   :  { %2299 = vsyncpa [#allocation15], 1 }
 0xaac   :  { %2300 = vsyncpa [#allocation4], 1 }

</bundles_post_ra>
